<compile_context>
chip_gen: v7x
topology: tpu7x:2x2x1
jax: 0.10.0
libtpu: 0.0.40
codegen_flags: <defaults>
</compile_context>

<pallas_src>
import functools

import jax
import jax.numpy as jnp
from jax import lax
from jax.experimental import pallas as pl
from jax.experimental.pallas import tpu as pltpu


def _round_up(x, m):
    return ((x + m - 1) // m) * m


def _batch_geometry(B):
    """Pick (B_pad, B_block); >= 2 batch blocks when the batch allows (v7x megacore)."""
    b8 = _round_up(B, 8)
    if b8 <= 16:
        return b8, b8                          # tiny batch: a single block
    if b8 <= 256:
        blk = _round_up((b8 + 1) // 2, 8)      # two blocks, each <= 128 rows
        return 2 * blk, blk
    return _round_up(B, 128), 128              # large batch: 128-row MXU-width blocks


def _time_geometry(T, B_block, max_t_chunk):
    """Pick (T_pad, t_chunk): keep hall scratch (t_chunk*B_block*128*4 B) <= ~8 MiB."""
    t8 = _round_up(T, 8)
    cap = 128 * max(1, min(4, (16384 // B_block) // 128))
    cap = min(cap, max(128, (max_t_chunk // 128) * 128))
    if t8 <= cap:
        return t8, t8                          # single chunk (block == full T dim)
    return _round_up(T, cap), cap              # multiple of 128 -> lane-dense out store


def _recnn_kernel(x_ref, whh_ref, wihb_ref, brow_ref, wlin_ref, blin_ref,
                  out_ref, h_sc, c_sc, hall_sc):
    # x_ref:    (t_chunk, B_block)       raw inputs (t on sublanes, B on lanes)
    # whh_ref:  (HP, 4*HP)               recurrent weights; gate slots lane-padded to HP=128,
    #                                    i/f/o slots pre-scaled by 0.5 (tanh trick)
    # wihb_ref: (B_block, 4*HP)          input weights replicated across rows (same scaling)
    # brow_ref: (1, 4*HP)                combined LSTM bias (same scaling), padded lanes 0
    # wlin_ref: (1, HP)                  Linear weight (lanes >= H are 0)
    # blin_ref: (1,) SMEM                Linear bias
    # out_ref:  (B_block, t_chunk)       y, T on lanes (lane-dense store)
    # h_sc/c_sc:(B_block, HP)            LSTM state carried across T chunks
    # hall_sc:  (t_chunk, B_block, HP)   per-step hidden states for the deferred head
    t_chunk, b_block = x_ref.shape
    hp = whh_ref.shape[0]

    @pl.when(pl.program_id(1) == 0)
    def _():
        h_sc[...] = jnp.zeros_like(h_sc)
        c_sc[...] = jnp.zeros_like(c_sc)

    # Loop-invariant loads / constants hoisted out of the recurrence.
    whh = whh_ref[...]          # (HP, 4*HP)
    wihb = wihb_ref[...]        # (B_block, 4*HP) -- every row == wih
    brow = brow_ref[...]        # (1, 4*HP)
    eye = (lax.broadcasted_iota(jnp.int32, (b_block, b_block), 0)
           == lax.broadcasted_iota(jnp.int32, (b_block, b_block), 1))

    def step(t, carry):
        h, c = carry
        # Fold the scalar input into an MXU outer product: diag(x_t) @ wih_rows
        # == x_t[:, None] * wih, with no per-step lane<->sublane relayout.
        xrow = x_ref[pl.ds(t, 1), :]                                   # (1, B), sublane load
        xdiag = jnp.where(eye, jnp.broadcast_to(xrow, (b_block, b_block)), 0.0)
        gates = (jnp.dot(h, whh, preferred_element_type=jnp.float32)
                 + jnp.dot(xdiag, wihb, preferred_element_type=jnp.float32)
                 + brow)                                               # (B, 4*HP)
        # Single EUP pass over all gates: i/f/o were pre-scaled by 0.5 in the
        # wrapper, so sigmoid(z) = 0.5*(1 + tanh(z/2)) falls out of one tanh.
        tg = jnp.tanh(gates)
        i = 0.5 * tg[:, 0 * hp:1 * hp] + 0.5
        f = 0.5 * tg[:, 1 * hp:2 * hp] + 0.5
        g = tg[:, 2 * hp:3 * hp]
        o = 0.5 * tg[:, 3 * hp:4 * hp] + 0.5
        c_new = f * c + i * g
        h_new = o * jnp.tanh(c_new)
        hall_sc[t] = h_new            # defer the Linear head to after the loop
        return h_new, c_new

    if t_chunk <= 16:
        unroll = t_chunk
    elif b_block >= 128:
        unroll = 4                    # (128, 4*128) f32 gate temps are 64 vregs: avoid spills
    else:
        unroll = 8
    h, c = lax.fori_loop(0, t_chunk, step, (h_sc[...], c_sc[...]), unroll=unroll)
    h_sc[...] = h
    c_sc[...] = c

    # Deferred Linear(H, 1): bulk VPU multiply + lane reduce over the whole chunk,
    # then one lane-dense (B_block, t_chunk) store.
    y = jnp.sum(hall_sc[...] * wlin_ref[...], axis=-1) + blin_ref[0]   # (t_chunk, B_block)
    out_ref[...] = y.T


def _prep_params(params, b_block):
    """Pad gate slots to 128 lanes, apply the tanh-trick 0.5 pre-scale to i/f/o."""
    w_ih, w_hh, b_ih, b_hh, w_lin, b_lin = params
    f32 = jnp.float32
    H = w_hh.shape[1]
    hp = _round_up(H, 128)
    g = 4 * hp
    scales = (0.5, 0.5, 1.0, 0.5)     # PyTorch gate order i, f, g, o

    whh_p = jnp.zeros((hp, g), f32)
    wih_p = jnp.zeros((1, g), f32)
    b_p = jnp.zeros((1, g), f32)
    b_comb = (b_ih + b_hh).astype(f32)
    for s, sc in enumerate(scales):
        cols = slice(s * hp, s * hp + H)
        rows = slice(s * H, (s + 1) * H)
        whh_p = whh_p.at[:H, cols].set(w_hh[rows, :].T.astype(f32) * sc)
        wih_p = wih_p.at[:, cols].set(w_ih[rows, 0].astype(f32)[None, :] * sc)
        b_p = b_p.at[:, cols].set(b_comb[rows][None, :] * sc)
    wihb = jnp.tile(wih_p, (b_block, 1))          # identical rows: diag(x) @ wihb == x ⊗ wih
    wlin_p = jnp.zeros((1, hp), f32).at[:, :H].set(w_lin.reshape(1, H).astype(f32))
    blin = b_lin.reshape(1).astype(f32)
    return whh_p, wihb, b_p, wlin_p, blin, hp, g


@functools.partial(jax.jit, static_argnames=("max_t_chunk",))
def recnn_forward(x, params, *, max_t_chunk=512):
    """x: (B, T, 1) float32 -> (B*T, 1) float32 (matches PyTorch RecNN.forward)."""
    B, T, _ = x.shape
    f32 = jnp.float32

    B_pad, B_block = _batch_geometry(B)
    T_pad, t_chunk = _time_geometry(T, B_block, max_t_chunk)
    n_bb = B_pad // B_block
    n_tc = T_pad // t_chunk

    whh_p, wihb, b_p, wlin_p, blin, hp, g = _prep_params(params, B_block)

    # Stream raw inputs only: (n_bb, T_pad, B_block) -- no 4H-expanded HBM array.
    x_tb = jnp.transpose(x[..., 0], (1, 0)).astype(f32)                 # (T, B)
    x_p = jnp.zeros((T_pad, B_pad), f32).at[:T, :B].set(x_tb)
    x_blk = x_p.reshape(T_pad, n_bb, B_block).transpose(1, 0, 2)

    out_bt = pl.pallas_call(
        _recnn_kernel,
        out_shape=jax.ShapeDtypeStruct((B_pad, T_pad), f32),
        grid_spec=pltpu.PrefetchScalarGridSpec(
            num_scalar_prefetch=0,
            grid=(n_bb, n_tc),
            in_specs=[
                pl.BlockSpec((None, t_chunk, B_block), lambda b, t: (b, t, 0)),
                pl.BlockSpec((hp, g), lambda b, t: (0, 0)),
                pl.BlockSpec((B_block, g), lambda b, t: (0, 0)),
                pl.BlockSpec((1, g), lambda b, t: (0, 0)),
                pl.BlockSpec((1, hp), lambda b, t: (0, 0)),
                pl.BlockSpec(memory_space=pltpu.MemorySpace.SMEM),
            ],
            out_specs=pl.BlockSpec((B_block, t_chunk), lambda b, t: (b, t)),
            scratch_shapes=[
                pltpu.VMEM((B_block, hp), f32),             # h carry (across T chunks)
                pltpu.VMEM((B_block, hp), f32),             # c carry
                pltpu.VMEM((t_chunk, B_block, hp), f32),    # per-step hidden states
            ],
        ),
        compiler_params=pltpu.CompilerParams(
            # T carries h/c -> must stay the innermost axis and "arbitrary".
            dimension_semantics=("parallel", "arbitrary"),
            # Explicit budget: total VMEM use is <= ~12 MiB with the geometry
            # above; 32 MiB headroom is safe on v5e/v6e (128 MiB) and v7x (64 MiB/TC).
            vmem_limit_bytes=32 * 1024 * 1024,
        ),
    )(x_blk, whh_p, wihb, b_p, wlin_p, blin)

    # PyTorch: output (B, T, H) -> reshape(-1, H) -> Linear -> (B*T, 1); our kernel
    # output is already (B, T), b-major / t-minor.
    return out_bt[:B, :T].reshape(B * T, 1)


def _recnn_reference(x, params):
    """Pure-JAX reference for correctness checking."""
    w_ih, w_hh, b_ih, b_hh, w_lin, b_lin = params
    B, T, _ = x.shape
    H = w_hh.shape[1]

    def step(carry, x_t):
        h, c = carry
        gates = x_t @ w_ih.T + h @ w_hh.T + b_ih + b_hh
        i = jax.nn.sigmoid(gates[:, 0 * H:1 * H])
        f = jax.nn.sigmoid(gates[:, 1 * H:2 * H])
        g = jnp.tanh(gates[:, 2 * H:3 * H])
        o = jax.nn.sigmoid(gates[:, 3 * H:4 * H])
        c = f * c + i * g
        h = o * jnp.tanh(c)
        return (h, c), h

    h0 = jnp.zeros((B, H), jnp.float32)
    c0 = jnp.zeros((B, H), jnp.float32)
    _, hs = lax.scan(step, (h0, c0), jnp.transpose(x, (1, 0, 2)).astype(jnp.float32))
    out = jnp.transpose(hs, (1, 0, 2)).reshape(-1, H)        # (B*T, H), b-major
    return out @ w_lin.T + b_lin                             # (B*T, 1)


def init_params(key, hidden_size):
    """Deterministic init with PyTorch LSTM/Linear shapes (uniform +-1/sqrt(H))."""
    H = hidden_size
    bound = 1.0 / jnp.sqrt(jnp.float32(H))
    ks = jax.random.split(key, 6)
    w_ih = jax.random.uniform(ks[0], (4 * H, 1), jnp.float32, -bound, bound)
    w_hh = jax.random.uniform(ks[1], (4 * H, H), jnp.float32, -bound, bound)
    b_ih = jax.random.uniform(ks[2], (4 * H,), jnp.float32, -bound, bound)
    b_hh = jax.random.uniform(ks[3], (4 * H,), jnp.float32, -bound, bound)
    w_lin = jax.random.uniform(ks[4], (1, H), jnp.float32, -bound, bound)
    b_lin = jax.random.uniform(ks[5], (1,), jnp.float32, -bound, bound)
    return (w_ih, w_hh, b_ih, b_hh, w_lin, b_lin)


if __name__ == "__main__":
    key = jax.random.PRNGKey(0)
    k_param, k_x1, k_x2 = jax.random.split(key, 3)

    H = 32
    params = init_params(k_param, H)

    # Small shape: single T chunk, single batch block.
    B, T = 2, 8
    x = jax.random.normal(k_x1, (B, T, 1), jnp.float32)
    out = jax.block_until_ready(recnn_forward(x, params))
    ref = _recnn_reference(x, params)
    assert out.shape == (B * T, 1), out.shape
    assert jnp.allclose(out, ref, rtol=1e-3, atol=1e-3), (
        f"max abs err {float(jnp.max(jnp.abs(out - ref)))}"
    )

    # Larger shape: 2 batch blocks (megacore axis) x 3 streamed T chunks + padding.
    B2, T2 = 20, 300
    x2 = jax.random.normal(k_x2, (B2, T2, 1), jnp.float32)
    out2 = jax.block_until_ready(recnn_forward(x2, params, max_t_chunk=128))
    ref2 = _recnn_reference(x2, params)
    assert out2.shape == (B2 * T2, 1), out2.shape
    assert jnp.allclose(out2, ref2, rtol=1e-3, atol=1e-3), (
        f"max abs err {float(jnp.max(jnp.abs(out2 - ref2)))}"
    )

    print("KERNEL_OK")
</pallas_src>

<mosaic_0001>
module attributes {stable_mosaic.version = 11 : i64} {
  func.func @_recnn_kernel(%arg0: i32, %arg1: i32, %arg2: memref<1x8x8xf32, #tpu.memory_space<vmem>>, %arg3: memref<128x512xf32, #tpu.memory_space<vmem>>, %arg4: memref<8x512xf32, #tpu.memory_space<vmem>>, %arg5: memref<1x512xf32, #tpu.memory_space<vmem>>, %arg6: memref<1x128xf32, #tpu.memory_space<vmem>>, %arg7: memref<1xf32, #tpu.memory_space<smem>>, %arg8: memref<8x8xf32, #tpu.memory_space<vmem>>, %arg9: memref<8x128xf32, #tpu.memory_space<vmem>>, %arg10: memref<8x128xf32, #tpu.memory_space<vmem>>, %arg11: memref<8x8x128xf32, #tpu.memory_space<vmem>>) attributes {dimension_semantics = [#tpu.dimension_semantics<parallel>, #tpu.dimension_semantics<arbitrary>], iteration_bounds = array<i64: 1, 1>, scalar_prefetch = 0 : i64, scratch_operands = 3 : i64, tpu.core_type = #tpu.core_type<tc>, window_params = [{transform_indices = @transform_0, window_bounds = array<i64: 1, 8, 8>}, {pipeline_mode = #tpu.pipeline_mode<synchronous>, transform_indices = @transform_1, window_bounds = array<i64: 128, 512>}, {pipeline_mode = #tpu.pipeline_mode<synchronous>, transform_indices = @transform_2, window_bounds = array<i64: 8, 512>}, {pipeline_mode = #tpu.pipeline_mode<synchronous>, transform_indices = @transform_3, window_bounds = array<i64: 1, 512>}, {pipeline_mode = #tpu.pipeline_mode<synchronous>, transform_indices = @transform_4, window_bounds = array<i64: 1, 128>}, {transform_indices = @transform_5, window_bounds = array<i64: 1>}, {transform_indices = @transform_6, window_bounds = array<i64: 8, 8>}]} {
    %c0_i32 = arith.constant 0 : i32
    %0 = arith.cmpi eq, %arg1, %c0_i32 : i32
    %1 = arith.extui %0 : i1 to i32
    %c0_i32_0 = arith.constant 0 : i32
    %2 = arith.cmpi ne, %1, %c0_i32_0 : i32
    scf.if %2 {
      %cst_127 = arith.constant 0.000000e+00 : f32
      %328 = vector.broadcast %cst_127 : f32 to vector<8x128xf32>
      %c0_128 = arith.constant 0 : index
      %c0_129 = arith.constant 0 : index
      %329 = vector.load %arg9[%c0_128, %c0_129] : memref<8x128xf32, #tpu.memory_space<vmem>>, vector<8x128xf32>
      tpu.vector_store %arg9[%c0_128, %c0_129], %328 {strides = array<i32>} : memref<8x128xf32, #tpu.memory_space<vmem>>, vector<8x128xf32>,
      %cst_130 = arith.constant 0.000000e+00 : f32
      %330 = vector.broadcast %cst_130 : f32 to vector<8x128xf32>
      %c0_131 = arith.constant 0 : index
      %c0_132 = arith.constant 0 : index
      %331 = vector.load %arg10[%c0_131, %c0_132] : memref<8x128xf32, #tpu.memory_space<vmem>>, vector<8x128xf32>
      tpu.vector_store %arg10[%c0_131, %c0_132], %330 {strides = array<i32>} : memref<8x128xf32, #tpu.memory_space<vmem>>, vector<8x128xf32>,
    } else {
    }
    %c0 = arith.constant 0 : index
    %c0_1 = arith.constant 0 : index
    %3 = vector.load %arg3[%c0, %c0_1] : memref<128x512xf32, #tpu.memory_space<vmem>>, vector<128x512xf32>
    %c0_2 = arith.constant 0 : index
    %c0_3 = arith.constant 0 : index
    %4 = vector.load %arg4[%c0_2, %c0_3] : memref<8x512xf32, #tpu.memory_space<vmem>>, vector<8x512xf32>
    %c0_4 = arith.constant 0 : index
    %c0_5 = arith.constant 0 : index
    %5 = vector.load %arg5[%c0_4, %c0_5] : memref<1x512xf32, #tpu.memory_space<vmem>>, vector<1x512xf32>
    %6 = tpu.iota {dimensions = array<i32: 0>} : vector<8x8xi32>
    %7 = tpu.iota {dimensions = array<i32: 1>} : vector<8x8xi32>
    %8 = arith.cmpi eq, %6, %7 : vector<8x8xi32>
    %c0_6 = arith.constant 0 : index
    %c0_7 = arith.constant 0 : index
    %9 = vector.load %arg9[%c0_6, %c0_7] : memref<8x128xf32, #tpu.memory_space<vmem>>, vector<8x128xf32>
    %c0_8 = arith.constant 0 : index
    %c0_9 = arith.constant 0 : index
    %10 = vector.load %arg10[%c0_8, %c0_9] : memref<8x128xf32, #tpu.memory_space<vmem>>, vector<8x128xf32>
    %c0_i32_10 = arith.constant 0 : i32
    %c0_11 = arith.constant 0 : index
    %11 = arith.index_cast %c0_i32_10 : i32 to index
    %c0_12 = arith.constant 0 : index
    %12 = vector.load %arg2[%c0_11, %11, %c0_12] : memref<1x8x8xf32, #tpu.memory_space<vmem>>, vector<1x1x8xf32>
    %13 = vector.shape_cast %12 : vector<1x1x8xf32> to vector<1x8xf32>
    %14 = vector.shape_cast %13 : vector<1x8xf32> to vector<1x8xf32>
    %15 = vector.broadcast %14 : vector<1x8xf32> to vector<8x8xf32>
    %cst = arith.constant 0.000000e+00 : f32
    %16 = vector.broadcast %cst : f32 to vector<8x8xf32>
    %17 = arith.select %8, %15, %16 : vector<8x8xi1>, vector<8x8xf32>
    %cst_13 = arith.constant dense<0.000000e+00> : vector<8x512xf32>
    %18 = tpu.matmul %9, %3, %cst_13 {dimension_numbers = #tpu.dot_dimension_numbers<[1], [0], [0], [1], [0, 0, 1, 1], [], []>} : vector<8x128xf32>, vector<128x512xf32>, vector<8x512xf32> -> vector<8x512xf32>
    %cst_14 = arith.constant dense<0.000000e+00> : vector<8x512xf32>
    %19 = tpu.matmul %17, %4, %cst_14 {dimension_numbers = #tpu.dot_dimension_numbers<[1], [0], [0], [1], [0, 0, 1, 1], [], []>} : vector<8x8xf32>, vector<8x512xf32>, vector<8x512xf32> -> vector<8x512xf32>
    %20 = arith.addf %18, %19 : vector<8x512xf32>
    %21 = vector.broadcast %5 : vector<1x512xf32> to vector<8x512xf32>
    %22 = arith.addf %20, %21 : vector<8x512xf32>
    %23 = math.tanh %22 : vector<8x512xf32>
    %24 = vector.extract_strided_slice %23 {offsets = [0, 0], sizes = [8, 128], strides = [1, 1]} : vector<8x512xf32> to vector<8x128xf32>
    %cst_15 = arith.constant 5.000000e-01 : f32
    %25 = vector.broadcast %cst_15 : f32 to vector<8x128xf32>
    %26 = arith.mulf %25, %24 : vector<8x128xf32>
    %cst_16 = arith.constant 5.000000e-01 : f32
    %27 = vector.broadcast %cst_16 : f32 to vector<8x128xf32>
    %28 = arith.addf %26, %27 : vector<8x128xf32>
    %29 = vector.extract_strided_slice %23 {offsets = [0, 128], sizes = [8, 128], strides = [1, 1]} : vector<8x512xf32> to vector<8x128xf32>
    %cst_17 = arith.constant 5.000000e-01 : f32
    %30 = vector.broadcast %cst_17 : f32 to vector<8x128xf32>
    %31 = arith.mulf %30, %29 : vector<8x128xf32>
    %cst_18 = arith.constant 5.000000e-01 : f32
    %32 = vector.broadcast %cst_18 : f32 to vector<8x128xf32>
    %33 = arith.addf %31, %32 : vector<8x128xf32>
    %34 = vector.extract_strided_slice %23 {offsets = [0, 256], sizes = [8, 128], strides = [1, 1]} : vector<8x512xf32> to vector<8x128xf32>
    %35 = vector.extract_strided_slice %23 {offsets = [0, 384], sizes = [8, 128], strides = [1, 1]} : vector<8x512xf32> to vector<8x128xf32>
    %cst_19 = arith.constant 5.000000e-01 : f32
    %36 = vector.broadcast %cst_19 : f32 to vector<8x128xf32>
    %37 = arith.mulf %36, %35 : vector<8x128xf32>
    %cst_20 = arith.constant 5.000000e-01 : f32
    %38 = vector.broadcast %cst_20 : f32 to vector<8x128xf32>
    %39 = arith.addf %37, %38 : vector<8x128xf32>
    %40 = arith.mulf %33, %10 : vector<8x128xf32>
    %41 = arith.mulf %28, %34 : vector<8x128xf32>
    %42 = arith.addf %40, %41 : vector<8x128xf32>
    %43 = math.tanh %42 : vector<8x128xf32>
    %44 = arith.mulf %39, %43 : vector<8x128xf32>
    %45 = arith.index_cast %c0_i32_10 : i32 to index
    %c0_21 = arith.constant 0 : index
    %c0_22 = arith.constant 0 : index
    %46 = vector.load %arg11[%45, %c0_21, %c0_22] : memref<8x8x128xf32, #tpu.memory_space<vmem>>, vector<1x8x128xf32>
    %47 = vector.shape_cast %46 : vector<1x8x128xf32> to vector<8x128xf32>
    %48 = vector.shape_cast %44 : vector<8x128xf32> to vector<1x8x128xf32>
    tpu.vector_store %arg11[%45, %c0_21, %c0_22], %48 {strides = array<i32>} : memref<8x8x128xf32, #tpu.memory_space<vmem>>, vector<1x8x128xf32>,
    %c1_i32 = arith.constant 1 : i32
    %c0_23 = arith.constant 0 : index
    %49 = arith.index_cast %c1_i32 : i32 to index
    %c0_24 = arith.constant 0 : index
    %50 = vector.load %arg2[%c0_23, %49, %c0_24] : memref<1x8x8xf32, #tpu.memory_space<vmem>>, vector<1x1x8xf32>
    %51 = vector.shape_cast %50 : vector<1x1x8xf32> to vector<1x8xf32>
    %52 = vector.shape_cast %51 : vector<1x8xf32> to vector<1x8xf32>
    %53 = vector.broadcast %52 : vector<1x8xf32> to vector<8x8xf32>
    %cst_25 = arith.constant 0.000000e+00 : f32
    %54 = vector.broadcast %cst_25 : f32 to vector<8x8xf32>
    %55 = arith.select %8, %53, %54 : vector<8x8xi1>, vector<8x8xf32>
    %cst_26 = arith.constant dense<0.000000e+00> : vector<8x512xf32>
    %56 = tpu.matmul %44, %3, %cst_26 {dimension_numbers = #tpu.dot_dimension_numbers<[1], [0], [0], [1], [0, 0, 1, 1], [], []>} : vector<8x128xf32>, vector<128x512xf32>, vector<8x512xf32> -> vector<8x512xf32>
    %cst_27 = arith.constant dense<0.000000e+00> : vector<8x512xf32>
    %57 = tpu.matmul %55, %4, %cst_27 {dimension_numbers = #tpu.dot_dimension_numbers<[1], [0], [0], [1], [0, 0, 1, 1], [], []>} : vector<8x8xf32>, vector<8x512xf32>, vector<8x512xf32> -> vector<8x512xf32>
    %58 = arith.addf %56, %57 : vector<8x512xf32>
    %59 = vector.broadcast %5 : vector<1x512xf32> to vector<8x512xf32>
    %60 = arith.addf %58, %59 : vector<8x512xf32>
    %61 = math.tanh %60 : vector<8x512xf32>
    %62 = vector.extract_strided_slice %61 {offsets = [0, 0], sizes = [8, 128], strides = [1, 1]} : vector<8x512xf32> to vector<8x128xf32>
    %cst_28 = arith.constant 5.000000e-01 : f32
    %63 = vector.broadcast %cst_28 : f32 to vector<8x128xf32>
    %64 = arith.mulf %63, %62 : vector<8x128xf32>
    %cst_29 = arith.constant 5.000000e-01 : f32
    %65 = vector.broadcast %cst_29 : f32 to vector<8x128xf32>
    %66 = arith.addf %64, %65 : vector<8x128xf32>
    %67 = vector.extract_strided_slice %61 {offsets = [0, 128], sizes = [8, 128], strides = [1, 1]} : vector<8x512xf32> to vector<8x128xf32>
    %cst_30 = arith.constant 5.000000e-01 : f32
    %68 = vector.broadcast %cst_30 : f32 to vector<8x128xf32>
    %69 = arith.mulf %68, %67 : vector<8x128xf32>
    %cst_31 = arith.constant 5.000000e-01 : f32
    %70 = vector.broadcast %cst_31 : f32 to vector<8x128xf32>
    %71 = arith.addf %69, %70 : vector<8x128xf32>
    %72 = vector.extract_strided_slice %61 {offsets = [0, 256], sizes = [8, 128], strides = [1, 1]} : vector<8x512xf32> to vector<8x128xf32>
    %73 = vector.extract_strided_slice %61 {offsets = [0, 384], sizes = [8, 128], strides = [1, 1]} : vector<8x512xf32> to vector<8x128xf32>
    %cst_32 = arith.constant 5.000000e-01 : f32
    %74 = vector.broadcast %cst_32 : f32 to vector<8x128xf32>
    %75 = arith.mulf %74, %73 : vector<8x128xf32>
    %cst_33 = arith.constant 5.000000e-01 : f32
    %76 = vector.broadcast %cst_33 : f32 to vector<8x128xf32>
    %77 = arith.addf %75, %76 : vector<8x128xf32>
    %78 = arith.mulf %71, %42 : vector<8x128xf32>
    %79 = arith.mulf %66, %72 : vector<8x128xf32>
    %80 = arith.addf %78, %79 : vector<8x128xf32>
    %81 = math.tanh %80 : vector<8x128xf32>
    %82 = arith.mulf %77, %81 : vector<8x128xf32>
    %83 = arith.index_cast %c1_i32 : i32 to index
    %c0_34 = arith.constant 0 : index
    %c0_35 = arith.constant 0 : index
    %84 = vector.load %arg11[%83, %c0_34, %c0_35] : memref<8x8x128xf32, #tpu.memory_space<vmem>>, vector<1x8x128xf32>
    %85 = vector.shape_cast %84 : vector<1x8x128xf32> to vector<8x128xf32>
    %86 = vector.shape_cast %82 : vector<8x128xf32> to vector<1x8x128xf32>
    tpu.vector_store %arg11[%83, %c0_34, %c0_35], %86 {strides = array<i32>} : memref<8x8x128xf32, #tpu.memory_space<vmem>>, vector<1x8x128xf32>,
    %c2_i32 = arith.constant 2 : i32
    %c0_36 = arith.constant 0 : index
    %87 = arith.index_cast %c2_i32 : i32 to index
    %c0_37 = arith.constant 0 : index
    %88 = vector.load %arg2[%c0_36, %87, %c0_37] : memref<1x8x8xf32, #tpu.memory_space<vmem>>, vector<1x1x8xf32>
    %89 = vector.shape_cast %88 : vector<1x1x8xf32> to vector<1x8xf32>
    %90 = vector.shape_cast %89 : vector<1x8xf32> to vector<1x8xf32>
    %91 = vector.broadcast %90 : vector<1x8xf32> to vector<8x8xf32>
    %cst_38 = arith.constant 0.000000e+00 : f32
    %92 = vector.broadcast %cst_38 : f32 to vector<8x8xf32>
    %93 = arith.select %8, %91, %92 : vector<8x8xi1>, vector<8x8xf32>
    %cst_39 = arith.constant dense<0.000000e+00> : vector<8x512xf32>
    %94 = tpu.matmul %82, %3, %cst_39 {dimension_numbers = #tpu.dot_dimension_numbers<[1], [0], [0], [1], [0, 0, 1, 1], [], []>} : vector<8x128xf32>, vector<128x512xf32>, vector<8x512xf32> -> vector<8x512xf32>
    %cst_40 = arith.constant dense<0.000000e+00> : vector<8x512xf32>
    %95 = tpu.matmul %93, %4, %cst_40 {dimension_numbers = #tpu.dot_dimension_numbers<[1], [0], [0], [1], [0, 0, 1, 1], [], []>} : vector<8x8xf32>, vector<8x512xf32>, vector<8x512xf32> -> vector<8x512xf32>
    %96 = arith.addf %94, %95 : vector<8x512xf32>
    %97 = vector.broadcast %5 : vector<1x512xf32> to vector<8x512xf32>
    %98 = arith.addf %96, %97 : vector<8x512xf32>
    %99 = math.tanh %98 : vector<8x512xf32>
    %100 = vector.extract_strided_slice %99 {offsets = [0, 0], sizes = [8, 128], strides = [1, 1]} : vector<8x512xf32> to vector<8x128xf32>
    %cst_41 = arith.constant 5.000000e-01 : f32
    %101 = vector.broadcast %cst_41 : f32 to vector<8x128xf32>
    %102 = arith.mulf %101, %100 : vector<8x128xf32>
    %cst_42 = arith.constant 5.000000e-01 : f32
    %103 = vector.broadcast %cst_42 : f32 to vector<8x128xf32>
    %104 = arith.addf %102, %103 : vector<8x128xf32>
    %105 = vector.extract_strided_slice %99 {offsets = [0, 128], sizes = [8, 128], strides = [1, 1]} : vector<8x512xf32> to vector<8x128xf32>
    %cst_43 = arith.constant 5.000000e-01 : f32
    %106 = vector.broadcast %cst_43 : f32 to vector<8x128xf32>
    %107 = arith.mulf %106, %105 : vector<8x128xf32>
    %cst_44 = arith.constant 5.000000e-01 : f32
    %108 = vector.broadcast %cst_44 : f32 to vector<8x128xf32>
    %109 = arith.addf %107, %108 : vector<8x128xf32>
    %110 = vector.extract_strided_slice %99 {offsets = [0, 256], sizes = [8, 128], strides = [1, 1]} : vector<8x512xf32> to vector<8x128xf32>
    %111 = vector.extract_strided_slice %99 {offsets = [0, 384], sizes = [8, 128], strides = [1, 1]} : vector<8x512xf32> to vector<8x128xf32>
    %cst_45 = arith.constant 5.000000e-01 : f32
    %112 = vector.broadcast %cst_45 : f32 to vector<8x128xf32>
    %113 = arith.mulf %112, %111 : vector<8x128xf32>
    %cst_46 = arith.constant 5.000000e-01 : f32
    %114 = vector.broadcast %cst_46 : f32 to vector<8x128xf32>
    %115 = arith.addf %113, %114 : vector<8x128xf32>
    %116 = arith.mulf %109, %80 : vector<8x128xf32>
    %117 = arith.mulf %104, %110 : vector<8x128xf32>
    %118 = arith.addf %116, %117 : vector<8x128xf32>
    %119 = math.tanh %118 : vector<8x128xf32>
    %120 = arith.mulf %115, %119 : vector<8x128xf32>
    %121 = arith.index_cast %c2_i32 : i32 to index
    %c0_47 = arith.constant 0 : index
    %c0_48 = arith.constant 0 : index
    %122 = vector.load %arg11[%121, %c0_47, %c0_48] : memref<8x8x128xf32, #tpu.memory_space<vmem>>, vector<1x8x128xf32>
    %123 = vector.shape_cast %122 : vector<1x8x128xf32> to vector<8x128xf32>
    %124 = vector.shape_cast %120 : vector<8x128xf32> to vector<1x8x128xf32>
    tpu.vector_store %arg11[%121, %c0_47, %c0_48], %124 {strides = array<i32>} : memref<8x8x128xf32, #tpu.memory_space<vmem>>, vector<1x8x128xf32>,
    %c3_i32 = arith.constant 3 : i32
    %c0_49 = arith.constant 0 : index
    %125 = arith.index_cast %c3_i32 : i32 to index
    %c0_50 = arith.constant 0 : index
    %126 = vector.load %arg2[%c0_49, %125, %c0_50] : memref<1x8x8xf32, #tpu.memory_space<vmem>>, vector<1x1x8xf32>
    %127 = vector.shape_cast %126 : vector<1x1x8xf32> to vector<1x8xf32>
    %128 = vector.shape_cast %127 : vector<1x8xf32> to vector<1x8xf32>
    %129 = vector.broadcast %128 : vector<1x8xf32> to vector<8x8xf32>
    %cst_51 = arith.constant 0.000000e+00 : f32
    %130 = vector.broadcast %cst_51 : f32 to vector<8x8xf32>
    %131 = arith.select %8, %129, %130 : vector<8x8xi1>, vector<8x8xf32>
    %cst_52 = arith.constant dense<0.000000e+00> : vector<8x512xf32>
    %132 = tpu.matmul %120, %3, %cst_52 {dimension_numbers = #tpu.dot_dimension_numbers<[1], [0], [0], [1], [0, 0, 1, 1], [], []>} : vector<8x128xf32>, vector<128x512xf32>, vector<8x512xf32> -> vector<8x512xf32>
    %cst_53 = arith.constant dense<0.000000e+00> : vector<8x512xf32>
    %133 = tpu.matmul %131, %4, %cst_53 {dimension_numbers = #tpu.dot_dimension_numbers<[1], [0], [0], [1], [0, 0, 1, 1], [], []>} : vector<8x8xf32>, vector<8x512xf32>, vector<8x512xf32> -> vector<8x512xf32>
    %134 = arith.addf %132, %133 : vector<8x512xf32>
    %135 = vector.broadcast %5 : vector<1x512xf32> to vector<8x512xf32>
    %136 = arith.addf %134, %135 : vector<8x512xf32>
    %137 = math.tanh %136 : vector<8x512xf32>
    %138 = vector.extract_strided_slice %137 {offsets = [0, 0], sizes = [8, 128], strides = [1, 1]} : vector<8x512xf32> to vector<8x128xf32>
    %cst_54 = arith.constant 5.000000e-01 : f32
    %139 = vector.broadcast %cst_54 : f32 to vector<8x128xf32>
    %140 = arith.mulf %139, %138 : vector<8x128xf32>
    %cst_55 = arith.constant 5.000000e-01 : f32
    %141 = vector.broadcast %cst_55 : f32 to vector<8x128xf32>
    %142 = arith.addf %140, %141 : vector<8x128xf32>
    %143 = vector.extract_strided_slice %137 {offsets = [0, 128], sizes = [8, 128], strides = [1, 1]} : vector<8x512xf32> to vector<8x128xf32>
    %cst_56 = arith.constant 5.000000e-01 : f32
    %144 = vector.broadcast %cst_56 : f32 to vector<8x128xf32>
    %145 = arith.mulf %144, %143 : vector<8x128xf32>
    %cst_57 = arith.constant 5.000000e-01 : f32
    %146 = vector.broadcast %cst_57 : f32 to vector<8x128xf32>
    %147 = arith.addf %145, %146 : vector<8x128xf32>
    %148 = vector.extract_strided_slice %137 {offsets = [0, 256], sizes = [8, 128], strides = [1, 1]} : vector<8x512xf32> to vector<8x128xf32>
    %149 = vector.extract_strided_slice %137 {offsets = [0, 384], sizes = [8, 128], strides = [1, 1]} : vector<8x512xf32> to vector<8x128xf32>
    %cst_58 = arith.constant 5.000000e-01 : f32
    %150 = vector.broadcast %cst_58 : f32 to vector<8x128xf32>
    %151 = arith.mulf %150, %149 : vector<8x128xf32>
    %cst_59 = arith.constant 5.000000e-01 : f32
    %152 = vector.broadcast %cst_59 : f32 to vector<8x128xf32>
    %153 = arith.addf %151, %152 : vector<8x128xf32>
    %154 = arith.mulf %147, %118 : vector<8x128xf32>
    %155 = arith.mulf %142, %148 : vector<8x128xf32>
    %156 = arith.addf %154, %155 : vector<8x128xf32>
    %157 = math.tanh %156 : vector<8x128xf32>
    %158 = arith.mulf %153, %157 : vector<8x128xf32>
    %159 = arith.index_cast %c3_i32 : i32 to index
    %c0_60 = arith.constant 0 : index
    %c0_61 = arith.constant 0 : index
    %160 = vector.load %arg11[%159, %c0_60, %c0_61] : memref<8x8x128xf32, #tpu.memory_space<vmem>>, vector<1x8x128xf32>
    %161 = vector.shape_cast %160 : vector<1x8x128xf32> to vector<8x128xf32>
    %162 = vector.shape_cast %158 : vector<8x128xf32> to vector<1x8x128xf32>
    tpu.vector_store %arg11[%159, %c0_60, %c0_61], %162 {strides = array<i32>} : memref<8x8x128xf32, #tpu.memory_space<vmem>>, vector<1x8x128xf32>,
    %c4_i32 = arith.constant 4 : i32
    %c0_62 = arith.constant 0 : index
    %163 = arith.index_cast %c4_i32 : i32 to index
    %c0_63 = arith.constant 0 : index
    %164 = vector.load %arg2[%c0_62, %163, %c0_63] : memref<1x8x8xf32, #tpu.memory_space<vmem>>, vector<1x1x8xf32>
    %165 = vector.shape_cast %164 : vector<1x1x8xf32> to vector<1x8xf32>
    %166 = vector.shape_cast %165 : vector<1x8xf32> to vector<1x8xf32>
    %167 = vector.broadcast %166 : vector<1x8xf32> to vector<8x8xf32>
    %cst_64 = arith.constant 0.000000e+00 : f32
    %168 = vector.broadcast %cst_64 : f32 to vector<8x8xf32>
    %169 = arith.select %8, %167, %168 : vector<8x8xi1>, vector<8x8xf32>
    %cst_65 = arith.constant dense<0.000000e+00> : vector<8x512xf32>
    %170 = tpu.matmul %158, %3, %cst_65 {dimension_numbers = #tpu.dot_dimension_numbers<[1], [0], [0], [1], [0, 0, 1, 1], [], []>} : vector<8x128xf32>, vector<128x512xf32>, vector<8x512xf32> -> vector<8x512xf32>
    %cst_66 = arith.constant dense<0.000000e+00> : vector<8x512xf32>
    %171 = tpu.matmul %169, %4, %cst_66 {dimension_numbers = #tpu.dot_dimension_numbers<[1], [0], [0], [1], [0, 0, 1, 1], [], []>} : vector<8x8xf32>, vector<8x512xf32>, vector<8x512xf32> -> vector<8x512xf32>
    %172 = arith.addf %170, %171 : vector<8x512xf32>
    %173 = vector.broadcast %5 : vector<1x512xf32> to vector<8x512xf32>
    %174 = arith.addf %172, %173 : vector<8x512xf32>
    %175 = math.tanh %174 : vector<8x512xf32>
    %176 = vector.extract_strided_slice %175 {offsets = [0, 0], sizes = [8, 128], strides = [1, 1]} : vector<8x512xf32> to vector<8x128xf32>
    %cst_67 = arith.constant 5.000000e-01 : f32
    %177 = vector.broadcast %cst_67 : f32 to vector<8x128xf32>
    %178 = arith.mulf %177, %176 : vector<8x128xf32>
    %cst_68 = arith.constant 5.000000e-01 : f32
    %179 = vector.broadcast %cst_68 : f32 to vector<8x128xf32>
    %180 = arith.addf %178, %179 : vector<8x128xf32>
    %181 = vector.extract_strided_slice %175 {offsets = [0, 128], sizes = [8, 128], strides = [1, 1]} : vector<8x512xf32> to vector<8x128xf32>
    %cst_69 = arith.constant 5.000000e-01 : f32
    %182 = vector.broadcast %cst_69 : f32 to vector<8x128xf32>
    %183 = arith.mulf %182, %181 : vector<8x128xf32>
    %cst_70 = arith.constant 5.000000e-01 : f32
    %184 = vector.broadcast %cst_70 : f32 to vector<8x128xf32>
    %185 = arith.addf %183, %184 : vector<8x128xf32>
    %186 = vector.extract_strided_slice %175 {offsets = [0, 256], sizes = [8, 128], strides = [1, 1]} : vector<8x512xf32> to vector<8x128xf32>
    %187 = vector.extract_strided_slice %175 {offsets = [0, 384], sizes = [8, 128], strides = [1, 1]} : vector<8x512xf32> to vector<8x128xf32>
    %cst_71 = arith.constant 5.000000e-01 : f32
    %188 = vector.broadcast %cst_71 : f32 to vector<8x128xf32>
    %189 = arith.mulf %188, %187 : vector<8x128xf32>
    %cst_72 = arith.constant 5.000000e-01 : f32
    %190 = vector.broadcast %cst_72 : f32 to vector<8x128xf32>
    %191 = arith.addf %189, %190 : vector<8x128xf32>
    %192 = arith.mulf %185, %156 : vector<8x128xf32>
    %193 = arith.mulf %180, %186 : vector<8x128xf32>
    %194 = arith.addf %192, %193 : vector<8x128xf32>
    %195 = math.tanh %194 : vector<8x128xf32>
    %196 = arith.mulf %191, %195 : vector<8x128xf32>
    %197 = arith.index_cast %c4_i32 : i32 to index
    %c0_73 = arith.constant 0 : index
    %c0_74 = arith.constant 0 : index
    %198 = vector.load %arg11[%197, %c0_73, %c0_74] : memref<8x8x128xf32, #tpu.memory_space<vmem>>, vector<1x8x128xf32>
    %199 = vector.shape_cast %198 : vector<1x8x128xf32> to vector<8x128xf32>
    %200 = vector.shape_cast %196 : vector<8x128xf32> to vector<1x8x128xf32>
    tpu.vector_store %arg11[%197, %c0_73, %c0_74], %200 {strides = array<i32>} : memref<8x8x128xf32, #tpu.memory_space<vmem>>, vector<1x8x128xf32>,
    %c5_i32 = arith.constant 5 : i32
    %c0_75 = arith.constant 0 : index
    %201 = arith.index_cast %c5_i32 : i32 to index
    %c0_76 = arith.constant 0 : index
    %202 = vector.load %arg2[%c0_75, %201, %c0_76] : memref<1x8x8xf32, #tpu.memory_space<vmem>>, vector<1x1x8xf32>
    %203 = vector.shape_cast %202 : vector<1x1x8xf32> to vector<1x8xf32>
    %204 = vector.shape_cast %203 : vector<1x8xf32> to vector<1x8xf32>
    %205 = vector.broadcast %204 : vector<1x8xf32> to vector<8x8xf32>
    %cst_77 = arith.constant 0.000000e+00 : f32
    %206 = vector.broadcast %cst_77 : f32 to vector<8x8xf32>
    %207 = arith.select %8, %205, %206 : vector<8x8xi1>, vector<8x8xf32>
    %cst_78 = arith.constant dense<0.000000e+00> : vector<8x512xf32>
    %208 = tpu.matmul %196, %3, %cst_78 {dimension_numbers = #tpu.dot_dimension_numbers<[1], [0], [0], [1], [0, 0, 1, 1], [], []>} : vector<8x128xf32>, vector<128x512xf32>, vector<8x512xf32> -> vector<8x512xf32>
    %cst_79 = arith.constant dense<0.000000e+00> : vector<8x512xf32>
    %209 = tpu.matmul %207, %4, %cst_79 {dimension_numbers = #tpu.dot_dimension_numbers<[1], [0], [0], [1], [0, 0, 1, 1], [], []>} : vector<8x8xf32>, vector<8x512xf32>, vector<8x512xf32> -> vector<8x512xf32>
    %210 = arith.addf %208, %209 : vector<8x512xf32>
    %211 = vector.broadcast %5 : vector<1x512xf32> to vector<8x512xf32>
    %212 = arith.addf %210, %211 : vector<8x512xf32>
    %213 = math.tanh %212 : vector<8x512xf32>
    %214 = vector.extract_strided_slice %213 {offsets = [0, 0], sizes = [8, 128], strides = [1, 1]} : vector<8x512xf32> to vector<8x128xf32>
    %cst_80 = arith.constant 5.000000e-01 : f32
    %215 = vector.broadcast %cst_80 : f32 to vector<8x128xf32>
    %216 = arith.mulf %215, %214 : vector<8x128xf32>
    %cst_81 = arith.constant 5.000000e-01 : f32
    %217 = vector.broadcast %cst_81 : f32 to vector<8x128xf32>
    %218 = arith.addf %216, %217 : vector<8x128xf32>
    %219 = vector.extract_strided_slice %213 {offsets = [0, 128], sizes = [8, 128], strides = [1, 1]} : vector<8x512xf32> to vector<8x128xf32>
    %cst_82 = arith.constant 5.000000e-01 : f32
    %220 = vector.broadcast %cst_82 : f32 to vector<8x128xf32>
    %221 = arith.mulf %220, %219 : vector<8x128xf32>
    %cst_83 = arith.constant 5.000000e-01 : f32
    %222 = vector.broadcast %cst_83 : f32 to vector<8x128xf32>
    %223 = arith.addf %221, %222 : vector<8x128xf32>
    %224 = vector.extract_strided_slice %213 {offsets = [0, 256], sizes = [8, 128], strides = [1, 1]} : vector<8x512xf32> to vector<8x128xf32>
    %225 = vector.extract_strided_slice %213 {offsets = [0, 384], sizes = [8, 128], strides = [1, 1]} : vector<8x512xf32> to vector<8x128xf32>
    %cst_84 = arith.constant 5.000000e-01 : f32
    %226 = vector.broadcast %cst_84 : f32 to vector<8x128xf32>
    %227 = arith.mulf %226, %225 : vector<8x128xf32>
    %cst_85 = arith.constant 5.000000e-01 : f32
    %228 = vector.broadcast %cst_85 : f32 to vector<8x128xf32>
    %229 = arith.addf %227, %228 : vector<8x128xf32>
    %230 = arith.mulf %223, %194 : vector<8x128xf32>
    %231 = arith.mulf %218, %224 : vector<8x128xf32>
    %232 = arith.addf %230, %231 : vector<8x128xf32>
    %233 = math.tanh %232 : vector<8x128xf32>
    %234 = arith.mulf %229, %233 : vector<8x128xf32>
    %235 = arith.index_cast %c5_i32 : i32 to index
    %c0_86 = arith.constant 0 : index
    %c0_87 = arith.constant 0 : index
    %236 = vector.load %arg11[%235, %c0_86, %c0_87] : memref<8x8x128xf32, #tpu.memory_space<vmem>>, vector<1x8x128xf32>
    %237 = vector.shape_cast %236 : vector<1x8x128xf32> to vector<8x128xf32>
    %238 = vector.shape_cast %234 : vector<8x128xf32> to vector<1x8x128xf32>
    tpu.vector_store %arg11[%235, %c0_86, %c0_87], %238 {strides = array<i32>} : memref<8x8x128xf32, #tpu.memory_space<vmem>>, vector<1x8x128xf32>,
    %c6_i32 = arith.constant 6 : i32
    %c0_88 = arith.constant 0 : index
    %239 = arith.index_cast %c6_i32 : i32 to index
    %c0_89 = arith.constant 0 : index
    %240 = vector.load %arg2[%c0_88, %239, %c0_89] : memref<1x8x8xf32, #tpu.memory_space<vmem>>, vector<1x1x8xf32>
    %241 = vector.shape_cast %240 : vector<1x1x8xf32> to vector<1x8xf32>
    %242 = vector.shape_cast %241 : vector<1x8xf32> to vector<1x8xf32>
    %243 = vector.broadcast %242 : vector<1x8xf32> to vector<8x8xf32>
    %cst_90 = arith.constant 0.000000e+00 : f32
    %244 = vector.broadcast %cst_90 : f32 to vector<8x8xf32>
    %245 = arith.select %8, %243, %244 : vector<8x8xi1>, vector<8x8xf32>
    %cst_91 = arith.constant dense<0.000000e+00> : vector<8x512xf32>
    %246 = tpu.matmul %234, %3, %cst_91 {dimension_numbers = #tpu.dot_dimension_numbers<[1], [0], [0], [1], [0, 0, 1, 1], [], []>} : vector<8x128xf32>, vector<128x512xf32>, vector<8x512xf32> -> vector<8x512xf32>
    %cst_92 = arith.constant dense<0.000000e+00> : vector<8x512xf32>
    %247 = tpu.matmul %245, %4, %cst_92 {dimension_numbers = #tpu.dot_dimension_numbers<[1], [0], [0], [1], [0, 0, 1, 1], [], []>} : vector<8x8xf32>, vector<8x512xf32>, vector<8x512xf32> -> vector<8x512xf32>
    %248 = arith.addf %246, %247 : vector<8x512xf32>
    %249 = vector.broadcast %5 : vector<1x512xf32> to vector<8x512xf32>
    %250 = arith.addf %248, %249 : vector<8x512xf32>
    %251 = math.tanh %250 : vector<8x512xf32>
    %252 = vector.extract_strided_slice %251 {offsets = [0, 0], sizes = [8, 128], strides = [1, 1]} : vector<8x512xf32> to vector<8x128xf32>
    %cst_93 = arith.constant 5.000000e-01 : f32
    %253 = vector.broadcast %cst_93 : f32 to vector<8x128xf32>
    %254 = arith.mulf %253, %252 : vector<8x128xf32>
    %cst_94 = arith.constant 5.000000e-01 : f32
    %255 = vector.broadcast %cst_94 : f32 to vector<8x128xf32>
    %256 = arith.addf %254, %255 : vector<8x128xf32>
    %257 = vector.extract_strided_slice %251 {offsets = [0, 128], sizes = [8, 128], strides = [1, 1]} : vector<8x512xf32> to vector<8x128xf32>
    %cst_95 = arith.constant 5.000000e-01 : f32
    %258 = vector.broadcast %cst_95 : f32 to vector<8x128xf32>
    %259 = arith.mulf %258, %257 : vector<8x128xf32>
    %cst_96 = arith.constant 5.000000e-01 : f32
    %260 = vector.broadcast %cst_96 : f32 to vector<8x128xf32>
    %261 = arith.addf %259, %260 : vector<8x128xf32>
    %262 = vector.extract_strided_slice %251 {offsets = [0, 256], sizes = [8, 128], strides = [1, 1]} : vector<8x512xf32> to vector<8x128xf32>
    %263 = vector.extract_strided_slice %251 {offsets = [0, 384], sizes = [8, 128], strides = [1, 1]} : vector<8x512xf32> to vector<8x128xf32>
    %cst_97 = arith.constant 5.000000e-01 : f32
    %264 = vector.broadcast %cst_97 : f32 to vector<8x128xf32>
    %265 = arith.mulf %264, %263 : vector<8x128xf32>
    %cst_98 = arith.constant 5.000000e-01 : f32
    %266 = vector.broadcast %cst_98 : f32 to vector<8x128xf32>
    %267 = arith.addf %265, %266 : vector<8x128xf32>
    %268 = arith.mulf %261, %232 : vector<8x128xf32>
    %269 = arith.mulf %256, %262 : vector<8x128xf32>
    %270 = arith.addf %268, %269 : vector<8x128xf32>
    %271 = math.tanh %270 : vector<8x128xf32>
    %272 = arith.mulf %267, %271 : vector<8x128xf32>
    %273 = arith.index_cast %c6_i32 : i32 to index
    %c0_99 = arith.constant 0 : index
    %c0_100 = arith.constant 0 : index
    %274 = vector.load %arg11[%273, %c0_99, %c0_100] : memref<8x8x128xf32, #tpu.memory_space<vmem>>, vector<1x8x128xf32>
    %275 = vector.shape_cast %274 : vector<1x8x128xf32> to vector<8x128xf32>
    %276 = vector.shape_cast %272 : vector<8x128xf32> to vector<1x8x128xf32>
    tpu.vector_store %arg11[%273, %c0_99, %c0_100], %276 {strides = array<i32>} : memref<8x8x128xf32, #tpu.memory_space<vmem>>, vector<1x8x128xf32>,
    %c7_i32 = arith.constant 7 : i32
    %c0_101 = arith.constant 0 : index
    %277 = arith.index_cast %c7_i32 : i32 to index
    %c0_102 = arith.constant 0 : index
    %278 = vector.load %arg2[%c0_101, %277, %c0_102] : memref<1x8x8xf32, #tpu.memory_space<vmem>>, vector<1x1x8xf32>
    %279 = vector.shape_cast %278 : vector<1x1x8xf32> to vector<1x8xf32>
    %280 = vector.shape_cast %279 : vector<1x8xf32> to vector<1x8xf32>
    %281 = vector.broadcast %280 : vector<1x8xf32> to vector<8x8xf32>
    %cst_103 = arith.constant 0.000000e+00 : f32
    %282 = vector.broadcast %cst_103 : f32 to vector<8x8xf32>
    %283 = arith.select %8, %281, %282 : vector<8x8xi1>, vector<8x8xf32>
    %cst_104 = arith.constant dense<0.000000e+00> : vector<8x512xf32>
    %284 = tpu.matmul %272, %3, %cst_104 {dimension_numbers = #tpu.dot_dimension_numbers<[1], [0], [0], [1], [0, 0, 1, 1], [], []>} : vector<8x128xf32>, vector<128x512xf32>, vector<8x512xf32> -> vector<8x512xf32>
    %cst_105 = arith.constant dense<0.000000e+00> : vector<8x512xf32>
    %285 = tpu.matmul %283, %4, %cst_105 {dimension_numbers = #tpu.dot_dimension_numbers<[1], [0], [0], [1], [0, 0, 1, 1], [], []>} : vector<8x8xf32>, vector<8x512xf32>, vector<8x512xf32> -> vector<8x512xf32>
    %286 = arith.addf %284, %285 : vector<8x512xf32>
    %287 = vector.broadcast %5 : vector<1x512xf32> to vector<8x512xf32>
    %288 = arith.addf %286, %287 : vector<8x512xf32>
    %289 = math.tanh %288 : vector<8x512xf32>
    %290 = vector.extract_strided_slice %289 {offsets = [0, 0], sizes = [8, 128], strides = [1, 1]} : vector<8x512xf32> to vector<8x128xf32>
    %cst_106 = arith.constant 5.000000e-01 : f32
    %291 = vector.broadcast %cst_106 : f32 to vector<8x128xf32>
    %292 = arith.mulf %291, %290 : vector<8x128xf32>
    %cst_107 = arith.constant 5.000000e-01 : f32
    %293 = vector.broadcast %cst_107 : f32 to vector<8x128xf32>
    %294 = arith.addf %292, %293 : vector<8x128xf32>
    %295 = vector.extract_strided_slice %289 {offsets = [0, 128], sizes = [8, 128], strides = [1, 1]} : vector<8x512xf32> to vector<8x128xf32>
    %cst_108 = arith.constant 5.000000e-01 : f32
    %296 = vector.broadcast %cst_108 : f32 to vector<8x128xf32>
    %297 = arith.mulf %296, %295 : vector<8x128xf32>
    %cst_109 = arith.constant 5.000000e-01 : f32
    %298 = vector.broadcast %cst_109 : f32 to vector<8x128xf32>
    %299 = arith.addf %297, %298 : vector<8x128xf32>
    %300 = vector.extract_strided_slice %289 {offsets = [0, 256], sizes = [8, 128], strides = [1, 1]} : vector<8x512xf32> to vector<8x128xf32>
    %301 = vector.extract_strided_slice %289 {offsets = [0, 384], sizes = [8, 128], strides = [1, 1]} : vector<8x512xf32> to vector<8x128xf32>
    %cst_110 = arith.constant 5.000000e-01 : f32
    %302 = vector.broadcast %cst_110 : f32 to vector<8x128xf32>
    %303 = arith.mulf %302, %301 : vector<8x128xf32>
    %cst_111 = arith.constant 5.000000e-01 : f32
    %304 = vector.broadcast %cst_111 : f32 to vector<8x128xf32>
    %305 = arith.addf %303, %304 : vector<8x128xf32>
    %306 = arith.mulf %299, %270 : vector<8x128xf32>
    %307 = arith.mulf %294, %300 : vector<8x128xf32>
    %308 = arith.addf %306, %307 : vector<8x128xf32>
    %309 = math.tanh %308 : vector<8x128xf32>
    %310 = arith.mulf %305, %309 : vector<8x128xf32>
    %311 = arith.index_cast %c7_i32 : i32 to index
    %c0_112 = arith.constant 0 : index
    %c0_113 = arith.constant 0 : index
    %312 = vector.load %arg11[%311, %c0_112, %c0_113] : memref<8x8x128xf32, #tpu.memory_space<vmem>>, vector<1x8x128xf32>
    %313 = vector.shape_cast %312 : vector<1x8x128xf32> to vector<8x128xf32>
    %314 = vector.shape_cast %310 : vector<8x128xf32> to vector<1x8x128xf32>
    tpu.vector_store %arg11[%311, %c0_112, %c0_113], %314 {strides = array<i32>} : memref<8x8x128xf32, #tpu.memory_space<vmem>>, vector<1x8x128xf32>,
    %c8_i32 = arith.constant 8 : i32
    %c0_114 = arith.constant 0 : index
    %c0_115 = arith.constant 0 : index
    %315 = vector.load %arg9[%c0_114, %c0_115] : memref<8x128xf32, #tpu.memory_space<vmem>>, vector<8x128xf32>
    tpu.vector_store %arg9[%c0_114, %c0_115], %310 {strides = array<i32>} : memref<8x128xf32, #tpu.memory_space<vmem>>, vector<8x128xf32>,
    %c0_116 = arith.constant 0 : index
    %c0_117 = arith.constant 0 : index
    %316 = vector.load %arg10[%c0_116, %c0_117] : memref<8x128xf32, #tpu.memory_space<vmem>>, vector<8x128xf32>
    tpu.vector_store %arg10[%c0_116, %c0_117], %308 {strides = array<i32>} : memref<8x128xf32, #tpu.memory_space<vmem>>, vector<8x128xf32>,
    %c0_118 = arith.constant 0 : index
    %c0_119 = arith.constant 0 : index
    %c0_120 = arith.constant 0 : index
    %317 = vector.load %arg11[%c0_118, %c0_119, %c0_120] : memref<8x8x128xf32, #tpu.memory_space<vmem>>, vector<8x8x128xf32>
    %c0_121 = arith.constant 0 : index
    %c0_122 = arith.constant 0 : index
    %318 = vector.load %arg6[%c0_121, %c0_122] : memref<1x128xf32, #tpu.memory_space<vmem>>, vector<1x128xf32>
    %319 = vector.shape_cast %318 : vector<1x128xf32> to vector<1x1x128xf32>
    %320 = vector.broadcast %319 : vector<1x1x128xf32> to vector<8x8x128xf32>
    %321 = arith.mulf %317, %320 : vector<8x8x128xf32>
    %cst_123 = arith.constant dense<0.000000e+00> : vector<8x8xf32>
    %322 = vector.multi_reduction <add>, %321, %cst_123 [2] : vector<8x8x128xf32> to vector<8x8xf32>
    %c0_124 = arith.constant 0 : index
    %323 = memref.load %arg7[%c0_124] : memref<1xf32, #tpu.memory_space<smem>>
    %324 = vector.broadcast %323 : f32 to vector<8x8xf32>
    %325 = arith.addf %322, %324 : vector<8x8xf32>
    %326 = tpu.transpose %325, [1, 0] : vector<8x8xf32> -> vector<8x8xf32>
    %c0_125 = arith.constant 0 : index
    %c0_126 = arith.constant 0 : index
    %327 = vector.load %arg8[%c0_125, %c0_126] : memref<8x8xf32, #tpu.memory_space<vmem>>, vector<8x8xf32>
    tpu.vector_store %arg8[%c0_125, %c0_126], %326 {strides = array<i32>} : memref<8x8xf32, #tpu.memory_space<vmem>>, vector<8x8xf32>,
    return
  }
  func.func @transform_0(%arg0: i32, %arg1: i32) -> (i32, i32, i32) {
    %c0_i32 = arith.constant 0 : i32
    %c0_i32_0 = arith.constant 0 : i32
    return %arg0, %arg1, %c0_i32 : i32, i32, i32
  }
  func.func @transform_1(%arg0: i32, %arg1: i32) -> (i32, i32) {
    %c0_i32 = arith.constant 0 : i32
    %c0_i32_0 = arith.constant 0 : i32
    %c0_i32_1 = arith.constant 0 : i32
    return %c0_i32, %c0_i32_0 : i32, i32
  }
  func.func @transform_2(%arg0: i32, %arg1: i32) -> (i32, i32) {
    %c0_i32 = arith.constant 0 : i32
    %c0_i32_0 = arith.constant 0 : i32
    %c0_i32_1 = arith.constant 0 : i32
    return %c0_i32, %c0_i32_0 : i32, i32
  }
  func.func @transform_3(%arg0: i32, %arg1: i32) -> (i32, i32) {
    %c0_i32 = arith.constant 0 : i32
    %c0_i32_0 = arith.constant 0 : i32
    %c0_i32_1 = arith.constant 0 : i32
    return %c0_i32, %c0_i32_0 : i32, i32
  }
  func.func @transform_4(%arg0: i32, %arg1: i32) -> (i32, i32) {
    %c0_i32 = arith.constant 0 : i32
    %c0_i32_0 = arith.constant 0 : i32
    %c0_i32_1 = arith.constant 0 : i32
    return %c0_i32, %c0_i32_0 : i32, i32
  }
  func.func @transform_5(%arg0: i32, %arg1: i32) -> i32 {
    %c0_i32 = arith.constant 0 : i32
    %c0_i32_0 = arith.constant 0 : i32
    return %c0_i32 : i32
  }
  func.func @transform_6(%arg0: i32, %arg1: i32) -> (i32, i32) {
    %c0_i32 = arith.constant 0 : i32
    return %arg0, %arg1 : i32, i32
  }
}

</mosaic_0001>

<bundles_post_ra>
// kernel: recnn_forward.1
= control target key start
LH: loop header
LB: loop body
LE: loop exit
PB: predicated region body
PF: predicated region fallthrough
CT: control target
= control target key end

     0   :  { %v99_v0 = vlaneseq  ;;  %v3436_v4 = vmov 0.0   ;;  %vm112_vm0 = vcmask 64512   ;;  %vm2730_vm2 = vcmask 1041409   ;;  %s4243_s2 = inlined_call_operand.vmem [shape: f32[8,512], index: 2, kind: input, shape index: {}]   ;;  %s4244_s1 = inlined_call_operand.vmem [shape: f32[128,512], index: 1, kind: input, shape index: {}]   ;;  %s4245_s0 = inlined_call_operand.vmem [shape: f32[1,8,8], index: 0, kind: input, shape index: {}]   ;;  %s4246_s3 = inlined_call_operand.vmem [shape: f32[1,512], index: 3, kind: input, shape index: {}]   ;;  %s4247_s4 = inlined_call_operand.vmem [shape: f32[1,128], index: 4, kind: input, shape index: {}]   ;;  %s4248_s5 = inlined_call_operand.<no memory space> [shape: f32[1], index: 5, kind: input, shape index: {}]   ;;  %s4249_s6 = inlined_call_operand.vmem [shape: f32[8,8], index: 6, kind: output, shape index: {}]  }
   0x1   :  { %v3475_v1 = vld [vmem:[%s4243_s2 + $0x8] sm:$0xff]  ;;  %v3480_v2 = vld [vmem:[%s4243_s2 + $0x18] sm:$0xff]  ;;  %v3485_v3 = vld [vmem:[%s4243_s2] sm:$0xff]  ;;  %180 = vmatprep.mubr.f32.mxu0 %v3436_v4  ;;  %251 = vmatprep.mubr.f32.mxu1 %v3436_v4  ;;  %vm2732_vm3 = vcmask 1042434   ;;  %vm2734_vm4 = vcmask 1043459   ;;  %vm2736_vm5 = vcmask 1044484  }
   0x2   :  { %116 = vmatprep.subr.mxu0 %v3475_v1  ;;  %187 = vmatprep.subr.mxu1 %v3480_v2  ;;  %v3494_v5 = vld [vmem:[%s4243_s2 + $0x10] sm:$0xff]  ;;  %v31_v6 = vld [vmem:[%s4244_s1 + $0x8] sm:$0xff]  ;;  %v3502_v8 = vshrl.u32 %v99_v0, 7  ;;  %v3504_v9 = vand.u32 127, %v99_v0  ;;  %v33_v11 = vld [vmem:[%s4244_s1 + $0x18] sm:$0xff]  ;;  %vm2738_vm6 = vcmask 1045509  }
   0x3   :  { %v35_v7 = vld [vmem:[%s4244_s1 + $0x28] sm:$0xff]  ;;  %117 = vmatpush1.msra.mxu0 %v3485_v3  ;;  %188 = vmatpush1.msra.mxu1 %v3494_v5  ;;  %v37_v12 = vld [vmem:[%s4244_s1 + $0x38] sm:$0xff]  ;;  %v2782_v13 = vld [vmem:[%s4245_s0] ss:$0 sm:$0xff]  ;;  %vm2740_vm7 = vcmask 1046534   ;;  %vm2742_vm8 = vcmask 1047559  }
   0x4   :  { %v3508_v10 = vpack.c.bf16 %v35_v7, %v31_v6  ;;  %v3519_v14 = vpack.c.bf16 %v37_v12, %v33_v11  ;;  %vm3523_vm1 = vcmp.eq.s32.totalorder %v3502_v8, %v3504_v9  ;;  %v30_v16 = vld [vmem:[%s4244_s1] sm:$0xff]  ;;  %v32_v18 = vld [vmem:[%s4244_s1 + $0x10] sm:$0xff]  ;;  %v39_v22 = vld [vmem:[%s4244_s1 + $0x48] sm:$0xff] }
   0x5   :  { %v34_v17 = vld [vmem:[%s4244_s1 + $0x20] sm:$0xff]  ;;  %v111_v19 = vsel %vm3523_vm1, %v2782_v13, 0.0  ;;  %v36_v21 = vld [vmem:[%s4244_s1 + $0x30] sm:$0xff]  ;;  %v43_v23 = vld [vmem:[%s4244_s1 + $0x68] sm:$0xff] }
   0x6   :  { %2808 = vmatprep.subr.bf16.mxu0 %v3508_v10  ;;  %v3539_v20 = vpack.c.bf16 %v34_v17, %v30_v16  ;;  %2840 = vmatprep.subr.bf16.mxu1 %v3519_v14  ;;  %v3552_v24 = vpack.c.bf16 %v36_v21, %v32_v18  ;;  %v3554_v25 = vpack.c.bf16 %v43_v23, %v39_v22  ;;  %v41_v26 = vld [vmem:[%s4244_s1 + $0x58] sm:$0xff]  ;;  %v38_v28 = vld [vmem:[%s4244_s1 + $0x40] sm:$0xff]  ;;  %v40_v31 = vld [vmem:[%s4244_s1 + $0x50] sm:$0xff] }
   0x7   :  { %2783 = vmatmul.mubr.msk.f32.vlgmr.msra.gmra.mrb[0].mxu0 %vm112_vm0, %v111_v19  ;;  %v45_v27 = vld [vmem:[%s4244_s1 + $0x78] sm:$0xff]  ;;  %2784 = vmatmul.mubr.msk.f32.vlgmr.msra.gmra.mrb[0].mxu1 %vm112_vm0, %v111_v19  ;;  %v42_v30 = vld [vmem:[%s4244_s1 + $0x60] sm:$0xff]  ;;  %v44_v32 = vld [vmem:[%s4244_s1 + $0x70] sm:$0xff] }
   0x8   :  { %2810 = vmatpush1.bf16.msra.mxu0 %v3539_v20  ;;  %v3567_v29 = vpack.c.bf16 %v45_v27, %v41_v26  ;;  %2842 = vmatpush1.bf16.msra.mxu1 %v3552_v24  ;;  %v3580_v33 = vpack.c.bf16 %v42_v30, %v38_v28  ;;  %v3582_v34 = vpack.c.bf16 %v44_v32, %v40_v31  ;;  %v47_v35 = vld [vmem:[%s4244_s1 + $0x88] sm:$0xff]  ;;  %v49_v37 = vld [vmem:[%s4244_s1 + $0x98] sm:$0xff]  ;;  %v46_v40 = vld [vmem:[%s4244_s1 + $0x80] sm:$0xff] }
   0x9   :  { %2812 = vmatprep.subr.bf16.mxu0 %v3554_v25  ;;  %v51_v36 = vld [vmem:[%s4244_s1 + $0xa8] sm:$0xff]  ;;  %v53_v39 = vld [vmem:[%s4244_s1 + $0xb8] sm:$0xff]  ;;  %v50_v41 = vld [vmem:[%s4244_s1 + $0xa0] sm:$0xff]  ;;  %322 = vmatprep.mubr.f32.mxu0 %v3436_v4 }
   0xa   :  { %2844 = vmatprep.subr.bf16.mxu1 %v3567_v29  ;;  %v3594_v38 = vpack.c.bf16 %v51_v36, %v47_v35  ;;  %v3606_v42 = vpack.c.bf16 %v53_v39, %v49_v37  ;;  %v48_v43 = vld [vmem:[%s4244_s1 + $0x90] sm:$0xff]  ;;  %v55_v45 = vld [vmem:[%s4244_s1 + $0xc8] sm:$0xff]  ;;  %393 = vmatprep.mubr.f32.mxu1 %v3436_v4  ;;  %v3619_v46 = vpack.c.bf16 %v50_v41, %v46_v40  ;;  %v57_v48 = vld [vmem:[%s4244_s1 + $0xd8] sm:$0xff] }
   0xb   :  { %v52_v44 = vld [vmem:[%s4244_s1 + $0xb0] sm:$0xff]  ;;  %v59_v47 = vld [vmem:[%s4244_s1 + $0xe8] sm:$0xff]  ;;  %v61_v49 = vld [vmem:[%s4244_s1 + $0xf8] sm:$0xff] }
   0xc   :  { %2814 = vmatpush1.bf16.msra.mxu0 %v3580_v33  ;;  %2846 = vmatpush1.bf16.msra.mxu1 %v3582_v34  ;;  %v3632_v50 = vpack.c.bf16 %v52_v44, %v48_v43  ;;  %v3634_v51 = vpack.c.bf16 %v59_v47, %v55_v45  ;;  %v54_v52 = vld [vmem:[%s4244_s1 + $0xc0] sm:$0xff]  ;;  %v56_v54 = vld [vmem:[%s4244_s1 + $0xd0] sm:$0xff]  ;;  %v3646_v55 = vpack.c.bf16 %v61_v49, %v57_v48  ;;  %v63_v57 = vld [vmem:[%s4244_s1 + $0x108] sm:$0xff] }
   0xd   :  { %2816 = vmatprep.subr.bf16.mxu0 %v3594_v38  ;;  %v58_v53 = vld [vmem:[%s4244_s1 + $0xe0] sm:$0xff]  ;;  %2848 = vmatprep.subr.bf16.mxu1 %v3606_v42  ;;  %v60_v56 = vld [vmem:[%s4244_s1 + $0xf0] sm:$0xff]  ;;  %v67_v58 = vld [vmem:[%s4244_s1 + $0x128] sm:$0xff] }
   0xe   :  { %v65_v59 = vld [vmem:[%s4244_s1 + $0x118] sm:$0xff]  ;;  %v3664_v61 = vpack.c.bf16 %v58_v53, %v54_v52  ;;  %v3668_v62 = vpack.c.bf16 %v60_v56, %v56_v54  ;;  %v3670_v63 = vpack.c.bf16 %v67_v58, %v63_v57  ;;  %v62_v0 = vld [vmem:[%s4244_s1 + $0x100] sm:$0xff]  ;;  %v64_v7 = vld [vmem:[%s4244_s1 + $0x110] sm:$0xff] }
   0xf   :  { %v69_v60 = vld [vmem:[%s4244_s1 + $0x138] sm:$0xff]  ;;  %v66_v6 = vld [vmem:[%s4244_s1 + $0x120] sm:$0xff]  ;;  %v68_v12 = vld [vmem:[%s4244_s1 + $0x130] sm:$0xff] }
  0x10   :  { %2818 = vmatpush1.bf16.msra.mxu0 %v3619_v46  ;;  %2850 = vmatpush1.bf16.msra.mxu1 %v3632_v50  ;;  %v3682_v11 = vpack.c.bf16 %v69_v60, %v65_v59  ;;  %v71_v13 = vld [vmem:[%s4244_s1 + $0x148] sm:$0xff]  ;;  %v73_v17 = vld [vmem:[%s4244_s1 + $0x158] sm:$0xff]  ;;  %v3700_v19 = vpack.c.bf16 %v66_v6, %v62_v0  ;;  %v3704_v21 = vpack.c.bf16 %v68_v12, %v64_v7  ;;  %v70_v23 = vld [vmem:[%s4244_s1 + $0x140] sm:$0xff] }
  0x11   :  { %2820 = vmatprep.subr.bf16.mxu0 %v3634_v51  ;;  %2852 = vmatprep.subr.bf16.mxu1 %v3646_v55  ;;  %v75_v16 = vld [vmem:[%s4244_s1 + $0x168] sm:$0xff]  ;;  %v77_v18 = vld [vmem:[%s4244_s1 + $0x178] sm:$0xff]  ;;  %v74_v26 = vld [vmem:[%s4244_s1 + $0x160] sm:$0xff] }
  0x12   :  { %v3706_v22 = vpack.c.bf16 %v75_v16, %v71_v13  ;;  %v72_v27 = vld [vmem:[%s4244_s1 + $0x150] sm:$0xff]  ;;  %v3718_v28 = vpack.c.bf16 %v77_v18, %v73_v17  ;;  %v79_v31 = vld [vmem:[%s4244_s1 + $0x188] sm:$0xff]  ;;  %v81_v35 = vld [vmem:[%s4244_s1 + $0x198] sm:$0xff]  ;;  %v3736_v37 = vpack.c.bf16 %v74_v26, %v70_v23  ;;  %v403_v17 = vsub.s32 0, %v3502_v8 }
  0x13   :  { %v76_v30 = vld [vmem:[%s4244_s1 + $0x170] sm:$0xff]  ;;  %v83_v32 = vld [vmem:[%s4244_s1 + $0x1a8] sm:$0xff]  ;;  %v85_v36 = vld [vmem:[%s4244_s1 + $0x1b8] sm:$0xff]  ;;  %v407_v23 = vsub.s32 1, %v3502_v8  ;;  %v411_v26 = vsub.s32 2, %v3502_v8 }
  0x14   :  { %2822 = vmatpush1.bf16.msra.mxu0 %v3664_v61  ;;  %2854 = vmatpush1.bf16.msra.mxu1 %v3668_v62  ;;  %v3740_v39 = vpack.c.bf16 %v76_v30, %v72_v27  ;;  %v3742_v40 = vpack.c.bf16 %v83_v32, %v79_v31  ;;  %v78_v41 = vld [vmem:[%s4244_s1 + $0x180] sm:$0xff]  ;;  %v80_v44 = vld [vmem:[%s4244_s1 + $0x190] sm:$0xff]  ;;  %v3754_v45 = vpack.c.bf16 %v85_v36, %v81_v35  ;;  %v87_v48 = vld [vmem:[%s4244_s1 + $0x1c8] sm:$0xff] }
  0x15   :  { %2824 = vmatprep.subr.bf16.mxu0 %v3670_v63  ;;  %2856 = vmatprep.subr.bf16.mxu1 %v3682_v11  ;;  %v82_v43 = vld [vmem:[%s4244_s1 + $0x1a0] sm:$0xff]  ;;  %v84_v47 = vld [vmem:[%s4244_s1 + $0x1b0] sm:$0xff]  ;;  %v91_v49 = vld [vmem:[%s4244_s1 + $0x1e8] sm:$0xff] }
  0x16   :  { %v89_v52 = vld [vmem:[%s4244_s1 + $0x1d8] sm:$0xff]  ;;  %v3772_v54 = vpack.c.bf16 %v82_v43, %v78_v41  ;;  %v3776_v56 = vpack.c.bf16 %v84_v47, %v80_v44  ;;  %v3778_v57 = vpack.c.bf16 %v91_v49, %v87_v48  ;;  %v86_v58 = vld [vmem:[%s4244_s1 + $0x1c0] sm:$0xff]  ;;  %v88_v0 = vld [vmem:[%s4244_s1 + $0x1d0] sm:$0xff]  ;;  %v415_v48 = vsub.s32 3, %v3502_v8 }
  0x17   :  { %v93_v53 = vld [vmem:[%s4244_s1 + $0x1f8] sm:$0xff]  ;;  %v90_v59 = vld [vmem:[%s4244_s1 + $0x1e0] sm:$0xff]  ;;  %v92_v6 = vld [vmem:[%s4244_s1 + $0x1f0] sm:$0xff] }
  0x18   :  { %2826 = vmatpush1.bf16.msra.mxu0 %v3700_v19  ;;  %2858 = vmatpush1.bf16.msra.mxu1 %v3704_v21  ;;  %v3787_v60 = vpack.c.bf16 %v93_v53, %v89_v52  ;;  %v3796_v7 = vpack.c.bf16 %v90_v59, %v86_v58  ;;  %v3800_v12 = vpack.c.bf16 %v92_v6, %v88_v0  ;;  %v2785_v13 = vld [vmem:[%s4245_s0 + $0x1] ss:$0 sm:$0xff] }
  0x19   :  { %2828 = vmatprep.subr.bf16.mxu0 %v3706_v22  ;;  %2860 = vmatprep.subr.bf16.mxu1 %v3718_v28  ;;  %v446_v16 = vsel %vm3523_vm1, %v2785_v13, 0.0  ;;  %v98_v18 = vld [vmem:[%s4246_s3] sm:$0xf] }
  0x1a   :  { %v3862_v27 = vrot.slane %v98_v18, %v403_v17  ;;  %v3864_v30 = vrot.slane %v98_v18, %v407_v23  ;;  %v3866_v31 = vrot.slane %v98_v18, %v411_v26  ;;  %v3872_v49 = vrot.slane %v98_v18, %v415_v48 }
  0x1c   :  { %2830 = vmatpush1.bf16.msra.mxu0 %v3736_v37  ;;  %2862 = vmatpush1.bf16.msra.mxu1 %v3740_v39 }
  0x1d   :  { %2832 = vmatprep.subr.bf16.mxu0 %v3742_v40  ;;  %2864 = vmatprep.subr.bf16.mxu1 %v3754_v45 }
  0x20   :  { %2834 = vmatpush1.bf16.msra.mxu0 %v3772_v54  ;;  %2866 = vmatpush1.bf16.msra.mxu1 %v3776_v56 }
  0x21   :  { %2836 = vmatprep.subr.bf16.mxu0 %v3778_v57  ;;  %2868 = vmatprep.subr.bf16.mxu1 %v3787_v60 }
  0x24   :  { %2838 = vmatpush1.bf16.msra.mxu0 %v3796_v7  ;;  %2870 = vmatpush1.bf16.msra.mxu1 %v3800_v12 }
  0x25   :  { %450 = vmatprep.subr.mxu0 %v3475_v1  ;;  %521 = vmatprep.subr.mxu1 %v3480_v2 }
  0x27   :  { %323 = vmatmul.mubr.f32.vlgmr.msra.gmra.mrb[0].mxu0 %v3436_v4  ;;  %394 = vmatmul.mubr.f32.vlgmr.msra.gmra.mrb[0].mxu1 %v3436_v4 }
  0x28   :  { %451 = vmatpush1.msra.mxu0 %v3485_v3  ;;  %522 = vmatpush1.msra.mxu1 %v3494_v5 }
  0x29   :  { %514 = vmatprep.mubr.f32.mxu0 %v3436_v4  ;;  %585 = vmatprep.mubr.f32.mxu1 %v3436_v4 }
  0x2a   :  { %2872 = vmatprep.subr.bf16.mxu0 %v3508_v10  ;;  %2904 = vmatprep.subr.bf16.mxu1 %v3519_v14 }
  0x2b   :  { %2786 = vmatmul.mubr.msk.f32.vlgmr.msra.gmra.mrb[2].mxu0 %vm112_vm0, %v446_v16  ;;  %2787 = vmatmul.mubr.msk.f32.vlgmr.msra.gmra.mrb[2].mxu1 %vm112_vm0, %v446_v16 }
  0x2c   :  { %2874 = vmatpush1.bf16.msra.mxu0 %v3539_v20  ;;  %2906 = vmatpush1.bf16.msra.mxu1 %v3552_v24 }
  0x2d   :  { %2876 = vmatprep.subr.bf16.mxu0 %v3554_v25  ;;  %2908 = vmatprep.subr.bf16.mxu1 %v3567_v29 }
  0x2e   :  { %656 = vmatprep.mubr.f32.mxu0 %v3436_v4  ;;  %727 = vmatprep.mubr.f32.mxu1 %v3436_v4 }
  0x30   :  { %2878 = vmatpush1.bf16.msra.mxu0 %v3580_v33  ;;  %2910 = vmatpush1.bf16.msra.mxu1 %v3582_v34 }
  0x31   :  { %2880 = vmatprep.subr.bf16.mxu0 %v3594_v38  ;;  %2912 = vmatprep.subr.bf16.mxu1 %v3606_v42 }
  0x34   :  { %2882 = vmatpush1.bf16.msra.mxu0 %v3619_v46  ;;  %2914 = vmatpush1.bf16.msra.mxu1 %v3632_v50 }
  0x35   :  { %2884 = vmatprep.subr.bf16.mxu0 %v3634_v51  ;;  %2916 = vmatprep.subr.bf16.mxu1 %v3646_v55 }
  0x38   :  { %2886 = vmatpush1.bf16.msra.mxu0 %v3664_v61  ;;  %2918 = vmatpush1.bf16.msra.mxu1 %v3668_v62 }
  0x39   :  { %2888 = vmatprep.subr.bf16.mxu0 %v3670_v63  ;;  %2920 = vmatprep.subr.bf16.mxu1 %v3682_v11 }
  0x3c   :  { %2890 = vmatpush1.bf16.msra.mxu0 %v3700_v19  ;;  %2922 = vmatpush1.bf16.msra.mxu1 %v3704_v21 }
  0x3d   :  { %2892 = vmatprep.subr.bf16.mxu0 %v3706_v22  ;;  %2924 = vmatprep.subr.bf16.mxu1 %v3718_v28 }
  0x40   :  { %2894 = vmatpush1.bf16.msra.mxu0 %v3736_v37  ;;  %2926 = vmatpush1.bf16.msra.mxu1 %v3740_v39 }
  0x41   :  { %2896 = vmatprep.subr.bf16.mxu0 %v3742_v40  ;;  %2928 = vmatprep.subr.bf16.mxu1 %v3754_v45 }
  0x44   :  { %2898 = vmatpush1.bf16.msra.mxu0 %v3772_v54  ;;  %2930 = vmatpush1.bf16.msra.mxu1 %v3776_v56 }
  0x45   :  { %2900 = vmatprep.subr.bf16.mxu0 %v3778_v57  ;;  %2932 = vmatprep.subr.bf16.mxu1 %v3787_v60 }
  0x48   :  { %2902 = vmatpush1.bf16.msra.mxu0 %v3796_v7  ;;  %2934 = vmatpush1.bf16.msra.mxu1 %v3800_v12 }
  0x49   :  { %764 = vmatprep.subr.mxu0 %v3475_v1  ;;  %835 = vmatprep.subr.mxu1 %v3480_v2 }
  0xfa   :  { %v324_v32 = vpop.f32.mrb[0].mxu0  ;;  %v395_v36 = vpop.f32.mrb[0].mxu1 }
  0xfb   :  { %v421_v35 = vadd.f32 %v3862_v27, %v324_v32  ;;  %v326_v41 = vpop.f32.mrb[1].mxu0  ;;  %v397_v44 = vpop.f32.mrb[1].mxu1  ;;  %v423_v47 = vadd.f32 %v3866_v31, %v395_v36 }
  0xfc   :  { %v422_v43 = vadd.f32 %v3864_v30, %v326_v41  ;;  %v424_v52 = vadd.f32 %v3872_v49, %v397_v44  ;;  %v3881_v41 = vld [vmem:[%s4247_s4] ss:$0 sm:$0xff] }
  0xfd   :  { %3352 = vtanh.f32 %v421_v35 }
  0xfe   :  { %3354 = vtanh.f32 %v422_v43 }
  0xff   :  { %3356 = vtanh.f32 %v423_v47  ;;  %v2788_v47 = vld [vmem:[%s4245_s0 + $0x2] ss:$0 sm:$0xff] }
 0x100   :  { %3358 = vtanh.f32 %v424_v52  ;;  %v760_v48 = vsel %vm3523_vm1, %v2788_v47, 0.0 }
 0x107   :  { %v3353_v53 = vpop.eup %3352 }
 0x108   :  { %v429_v58 = vmul.f32 0.5, %v3353_v53  ;;  %v3355_v59 = vpop.eup %3354 }
 0x109   :  { %v431_v6 = vmul.f32 0.5, %v3355_v59  ;;  %v3357_v13 = vpop.eup %3356 }
 0x10a   :  { %v430_v0 = vadd.f32 0.5, %v429_v58  ;;  %v3359_v32 = vpop.eup %3358 }
 0x10b   :  { %v432_v16 = vadd.f32 0.5, %v431_v6  ;;  %v433_v35 = vmul.f32 0.5, %v3359_v32 }
 0x10c   :  { %v436_v17 = vmul.f32 %v3357_v13, %v430_v0 }
 0x10d   :  { %v435_v23 = vmul.f32 0.0, %v432_v16  ;;  %v434_v18 = vadd.f32 0.5, %v433_v35 }
 0x10f   :  { %v3875_v26 = vadd.f32 %v436_v17, %v435_v23 }
 0x111   :  { %3360 = vtanh.f32 %v3875_v26 }
 0x11b   :  { %v3361_v36 = vpop.eup %3360 }
 0x11c   :  { %v439_v43 = vmul.f32 %v3361_v36, %v434_v18 }
 0x11e   :  { %657 = vmatmul.mubr.f32.vlgmr.msra.gmra.mrb[2].mxu0 %v439_v43  ;;  %728 = vmatmul.mubr.f32.vlgmr.msra.gmra.mrb[2].mxu1 %v439_v43  ;;  %v2656_v44 = vmul.f32 %v3881_v41, %v439_v43 }
 0x11f   :  { %765 = vmatpush1.msra.mxu0 %v3485_v3  ;;  %836 = vmatpush1.msra.mxu1 %v3494_v5 }
 0x120   :  { %2664 = vadd.xlane.f32.xlu0 %v2656_v44  ;;  %828 = vmatprep.mubr.f32.mxu0 %v3436_v4 }
 0x121   :  { %899 = vmatprep.mubr.f32.mxu1 %v3436_v4  ;;  %2936 = vmatprep.subr.bf16.mxu0 %v3508_v10 }
 0x122   :  { %2968 = vmatprep.subr.bf16.mxu1 %v3519_v14  ;;  %2789 = vmatmul.mubr.msk.f32.vlgmr.msra.gmra.mrb[4].mxu0 %vm112_vm0, %v760_v48 }
 0x123   :  { %2790 = vmatmul.mubr.msk.f32.vlgmr.msra.gmra.mrb[4].mxu1 %vm112_vm0, %v760_v48  ;;  %2938 = vmatpush1.bf16.msra.mxu0 %v3539_v20 }
 0x124   :  { %2970 = vmatpush1.bf16.msra.mxu1 %v3552_v24  ;;  %2940 = vmatprep.subr.bf16.mxu0 %v3554_v25 }
 0x125   :  { %2972 = vmatprep.subr.bf16.mxu1 %v3567_v29  ;;  %970 = vmatprep.mubr.f32.mxu0 %v3436_v4 }
 0x126   :  { %1041 = vmatprep.mubr.f32.mxu1 %v3436_v4 }
 0x127   :  { %2942 = vmatpush1.bf16.msra.mxu0 %v3580_v33 }
 0x128   :  { %2974 = vmatpush1.bf16.msra.mxu1 %v3582_v34  ;;  %2944 = vmatprep.subr.bf16.mxu0 %v3594_v38 }
 0x129   :  { %2976 = vmatprep.subr.bf16.mxu1 %v3606_v42 }
 0x12b   :  { %2946 = vmatpush1.bf16.msra.mxu0 %v3619_v46 }
 0x12c   :  { %2978 = vmatpush1.bf16.msra.mxu1 %v3632_v50  ;;  %2948 = vmatprep.subr.bf16.mxu0 %v3634_v51 }
 0x12d   :  { %2980 = vmatprep.subr.bf16.mxu1 %v3646_v55 }
 0x12f   :  { %2950 = vmatpush1.bf16.msra.mxu0 %v3664_v61 }
 0x130   :  { %2982 = vmatpush1.bf16.msra.mxu1 %v3668_v62  ;;  %2952 = vmatprep.subr.bf16.mxu0 %v3670_v63 }
 0x131   :  { %2984 = vmatprep.subr.bf16.mxu1 %v3682_v11 }
 0x133   :  { %2954 = vmatpush1.bf16.msra.mxu0 %v3700_v19 }
 0x134   :  { %2986 = vmatpush1.bf16.msra.mxu1 %v3704_v21  ;;  %2956 = vmatprep.subr.bf16.mxu0 %v3706_v22 }
 0x135   :  { %2988 = vmatprep.subr.bf16.mxu1 %v3718_v28 }
 0x137   :  { %2958 = vmatpush1.bf16.msra.mxu0 %v3736_v37 }
 0x138   :  { %2990 = vmatpush1.bf16.msra.mxu1 %v3740_v39  ;;  %2960 = vmatprep.subr.bf16.mxu0 %v3742_v40 }
 0x139   :  { %2992 = vmatprep.subr.bf16.mxu1 %v3754_v45 }
 0x13b   :  { %2962 = vmatpush1.bf16.msra.mxu0 %v3772_v54 }
 0x13c   :  { %2994 = vmatpush1.bf16.msra.mxu1 %v3776_v56  ;;  %2964 = vmatprep.subr.bf16.mxu0 %v3778_v57 }
 0x13d   :  { %2996 = vmatprep.subr.bf16.mxu1 %v3787_v60 }
 0x13f   :  { %2966 = vmatpush1.bf16.msra.mxu0 %v3796_v7 }
 0x140   :  { %2998 = vmatpush1.bf16.msra.mxu1 %v3800_v12  ;;  %1078 = vmatprep.subr.mxu0 %v3475_v1 }
 0x141   :  { %1149 = vmatprep.subr.mxu1 %v3480_v2 }
 0x1f1   :  { %v658_v52 = vpop.f32.mrb[2].mxu0  ;;  %v729_v53 = vpop.f32.mrb[2].mxu1 }
 0x1f2   :  { %v734_v58 = vadd.f32 %v658_v52, %v3862_v27  ;;  %v660_v59 = vpop.f32.mrb[3].mxu0  ;;  %v731_v0 = vpop.f32.mrb[3].mxu1  ;;  %v736_v13 = vadd.f32 %v729_v53, %v3866_v31 }
 0x1f3   :  { %v735_v6 = vadd.f32 %v660_v59, %v3864_v30  ;;  %v737_v16 = vadd.f32 %v731_v0, %v3872_v49 }
 0x1f4   :  { %3362 = vtanh.f32 %v734_v58 }
 0x1f5   :  { %3364 = vtanh.f32 %v735_v6 }
 0x1f6   :  { %3366 = vtanh.f32 %v736_v13 }
 0x1f7   :  { %3368 = vtanh.f32 %v737_v16 }
 0x1fe   :  { %v3363_v17 = vpop.eup %3362 }
 0x1ff   :  { %v742_v23 = vmul.f32 0.5, %v3363_v17  ;;  %v3365_v32 = vpop.eup %3364 }
 0x200   :  { %v744_v18 = vmul.f32 0.5, %v3365_v32  ;;  %v3367_v36 = vpop.eup %3366 }
 0x201   :  { %v743_v35 = vadd.f32 0.5, %v742_v23  ;;  %v3369_v52 = vpop.eup %3368 }
 0x202   :  { %v745_v43 = vadd.f32 0.5, %v744_v18  ;;  %v746_v53 = vmul.f32 0.5, %v3369_v52 }
 0x203   :  { %v749_v44 = vmul.f32 %v3367_v36, %v743_v35 }
 0x204   :  { %v748_v47 = vmul.f32 %v745_v43, %v3875_v26  ;;  %v747_v58 = vadd.f32 0.5, %v746_v53  ;;  %v2791_v26 = vld [vmem:[%s4245_s0 + $0x3] ss:$0 sm:$0xff] }
 0x205   :  { %v1074_v13 = vsel %vm3523_vm1, %v2791_v26, 0.0 }
 0x206   :  { %v3936_v48 = vadd.f32 %v749_v44, %v748_v47 }
 0x208   :  { %3370 = vtanh.f32 %v3936_v48 }
 0x212   :  { %v3371_v59 = vpop.eup %3370 }
 0x213   :  { %v752_v0 = vmul.f32 %v3371_v59, %v747_v58 }
 0x215   :  { %971 = vmatmul.mubr.f32.vlgmr.msra.gmra.mrb[4].mxu0 %v752_v0  ;;  %1042 = vmatmul.mubr.f32.vlgmr.msra.gmra.mrb[4].mxu1 %v752_v0  ;;  %v2657_v6 = vmul.f32 %v3881_v41, %v752_v0 }
 0x216   :  { %1079 = vmatpush1.msra.mxu0 %v3485_v3  ;;  %1150 = vmatpush1.msra.mxu1 %v3494_v5 }
 0x217   :  { %2666 = vadd.xlane.f32.xlu0 %v2657_v6  ;;  %1142 = vmatprep.mubr.f32.mxu0 %v3436_v4 }
 0x218   :  { %1213 = vmatprep.mubr.f32.mxu1 %v3436_v4  ;;  %3000 = vmatprep.subr.bf16.mxu0 %v3508_v10 }
 0x219   :  { %3032 = vmatprep.subr.bf16.mxu1 %v3519_v14  ;;  %2792 = vmatmul.mubr.msk.f32.vlgmr.msra.gmra.mrb[6].mxu0 %vm112_vm0, %v1074_v13 }
 0x21a   :  { %2793 = vmatmul.mubr.msk.f32.vlgmr.msra.gmra.mrb[6].mxu1 %vm112_vm0, %v1074_v13  ;;  %3002 = vmatpush1.bf16.msra.mxu0 %v3539_v20 }
 0x21b   :  { %3034 = vmatpush1.bf16.msra.mxu1 %v3552_v24  ;;  %3004 = vmatprep.subr.bf16.mxu0 %v3554_v25 }
 0x21c   :  { %3036 = vmatprep.subr.bf16.mxu1 %v3567_v29  ;;  %1284 = vmatprep.mubr.f32.mxu0 %v3436_v4 }
 0x21d   :  { %1355 = vmatprep.mubr.f32.mxu1 %v3436_v4 }
 0x21e   :  { %3006 = vmatpush1.bf16.msra.mxu0 %v3580_v33 }
 0x21f   :  { %3038 = vmatpush1.bf16.msra.mxu1 %v3582_v34  ;;  %3008 = vmatprep.subr.bf16.mxu0 %v3594_v38 }
 0x220   :  { %3040 = vmatprep.subr.bf16.mxu1 %v3606_v42 }
 0x222   :  { %3010 = vmatpush1.bf16.msra.mxu0 %v3619_v46 }
 0x223   :  { %3042 = vmatpush1.bf16.msra.mxu1 %v3632_v50  ;;  %3012 = vmatprep.subr.bf16.mxu0 %v3634_v51 }
 0x224   :  { %3044 = vmatprep.subr.bf16.mxu1 %v3646_v55 }
 0x226   :  { %3014 = vmatpush1.bf16.msra.mxu0 %v3664_v61 }
 0x227   :  { %3046 = vmatpush1.bf16.msra.mxu1 %v3668_v62  ;;  %3016 = vmatprep.subr.bf16.mxu0 %v3670_v63 }
 0x228   :  { %3048 = vmatprep.subr.bf16.mxu1 %v3682_v11 }
 0x22a   :  { %3018 = vmatpush1.bf16.msra.mxu0 %v3700_v19 }
 0x22b   :  { %3050 = vmatpush1.bf16.msra.mxu1 %v3704_v21  ;;  %3020 = vmatprep.subr.bf16.mxu0 %v3706_v22 }
 0x22c   :  { %3052 = vmatprep.subr.bf16.mxu1 %v3718_v28 }
 0x22e   :  { %3022 = vmatpush1.bf16.msra.mxu0 %v3736_v37 }
 0x22f   :  { %3054 = vmatpush1.bf16.msra.mxu1 %v3740_v39  ;;  %3024 = vmatprep.subr.bf16.mxu0 %v3742_v40 }
 0x230   :  { %3056 = vmatprep.subr.bf16.mxu1 %v3754_v45 }
 0x232   :  { %3026 = vmatpush1.bf16.msra.mxu0 %v3772_v54 }
 0x233   :  { %3058 = vmatpush1.bf16.msra.mxu1 %v3776_v56  ;;  %3028 = vmatprep.subr.bf16.mxu0 %v3778_v57 }
 0x234   :  { %3060 = vmatprep.subr.bf16.mxu1 %v3787_v60 }
 0x236   :  { %3030 = vmatpush1.bf16.msra.mxu0 %v3796_v7 }
 0x237   :  { %3062 = vmatpush1.bf16.msra.mxu1 %v3800_v12  ;;  %1392 = vmatprep.subr.mxu0 %v3475_v1 }
 0x238   :  { %1463 = vmatprep.subr.mxu1 %v3480_v2 }
 0x2e8   :  { %v972_v16 = vpop.f32.mrb[4].mxu0  ;;  %v1043_v17 = vpop.f32.mrb[4].mxu1 }
 0x2e9   :  { %v1048_v23 = vadd.f32 %v972_v16, %v3862_v27  ;;  %v974_v32 = vpop.f32.mrb[5].mxu0  ;;  %v1045_v35 = vpop.f32.mrb[5].mxu1  ;;  %v1050_v36 = vadd.f32 %v1043_v17, %v3866_v31 }
 0x2ea   :  { %v1049_v18 = vadd.f32 %v974_v32, %v3864_v30  ;;  %v1051_v43 = vadd.f32 %v1045_v35, %v3872_v49 }
 0x2eb   :  { %3372 = vtanh.f32 %v1048_v23 }
 0x2ec   :  { %3374 = vtanh.f32 %v1049_v18 }
 0x2ed   :  { %3376 = vtanh.f32 %v1050_v36 }
 0x2ee   :  { %3378 = vtanh.f32 %v1051_v43 }
 0x2f5   :  { %v3373_v44 = vpop.eup %3372 }
 0x2f6   :  { %v1056_v47 = vmul.f32 0.5, %v3373_v44  ;;  %v3375_v52 = vpop.eup %3374 }
 0x2f7   :  { %v1058_v58 = vmul.f32 0.5, %v3375_v52  ;;  %v3377_v59 = vpop.eup %3376 }
 0x2f8   :  { %v1057_v53 = vadd.f32 0.5, %v1056_v47  ;;  %v3379_v16 = vpop.eup %3378 }
 0x2f9   :  { %v1059_v0 = vadd.f32 0.5, %v1058_v58  ;;  %v1060_v17 = vmul.f32 0.5, %v3379_v16 }
 0x2fa   :  { %v1063_v6 = vmul.f32 %v3377_v59, %v1057_v53 }
 0x2fb   :  { %v1062_v26 = vmul.f32 %v1059_v0, %v3936_v48  ;;  %v1061_v23 = vadd.f32 0.5, %v1060_v17  ;;  %v2794_v48 = vld [vmem:[%s4245_s0 + $0x4] ss:$0 sm:$0xff] }
 0x2fc   :  { %v1388_v36 = vsel %vm3523_vm1, %v2794_v48, 0.0 }
 0x2fd   :  { %v3992_v13 = vadd.f32 %v1063_v6, %v1062_v26 }
 0x2ff   :  { %3380 = vtanh.f32 %v3992_v13 }
 0x309   :  { %v3381_v32 = vpop.eup %3380 }
 0x30a   :  { %v1066_v35 = vmul.f32 %v3381_v32, %v1061_v23 }
 0x30c   :  { %1285 = vmatmul.mubr.f32.vlgmr.msra.gmra.mrb[6].mxu0 %v1066_v35  ;;  %1356 = vmatmul.mubr.f32.vlgmr.msra.gmra.mrb[6].mxu1 %v1066_v35  ;;  %v2658_v18 = vmul.f32 %v3881_v41, %v1066_v35 }
 0x30d   :  { %1393 = vmatpush1.msra.mxu0 %v3485_v3  ;;  %1464 = vmatpush1.msra.mxu1 %v3494_v5 }
 0x30e   :  { %2668 = vadd.xlane.f32.xlu1 %v2658_v18  ;;  %1456 = vmatprep.mubr.f32.mxu0 %v3436_v4 }
 0x30f   :  { %1527 = vmatprep.mubr.f32.mxu1 %v3436_v4  ;;  %3064 = vmatprep.subr.bf16.mxu0 %v3508_v10 }
 0x310   :  { %3096 = vmatprep.subr.bf16.mxu1 %v3519_v14  ;;  %2795 = vmatmul.mubr.msk.f32.vlgmr.msra.gmra.mrb[8].mxu0 %vm112_vm0, %v1388_v36 }
 0x311   :  { %2796 = vmatmul.mubr.msk.f32.vlgmr.msra.gmra.mrb[8].mxu1 %vm112_vm0, %v1388_v36  ;;  %3066 = vmatpush1.bf16.msra.mxu0 %v3539_v20 }
 0x312   :  { %3098 = vmatpush1.bf16.msra.mxu1 %v3552_v24  ;;  %3068 = vmatprep.subr.bf16.mxu0 %v3554_v25 }
 0x313   :  { %3100 = vmatprep.subr.bf16.mxu1 %v3567_v29  ;;  %1598 = vmatprep.mubr.f32.mxu0 %v3436_v4 }
 0x314   :  { %1669 = vmatprep.mubr.f32.mxu1 %v3436_v4 }
 0x315   :  { %3070 = vmatpush1.bf16.msra.mxu0 %v3580_v33 }
 0x316   :  { %3102 = vmatpush1.bf16.msra.mxu1 %v3582_v34  ;;  %3072 = vmatprep.subr.bf16.mxu0 %v3594_v38 }
 0x317   :  { %3104 = vmatprep.subr.bf16.mxu1 %v3606_v42 }
 0x319   :  { %3074 = vmatpush1.bf16.msra.mxu0 %v3619_v46 }
 0x31a   :  { %3106 = vmatpush1.bf16.msra.mxu1 %v3632_v50  ;;  %3076 = vmatprep.subr.bf16.mxu0 %v3634_v51 }
 0x31b   :  { %3108 = vmatprep.subr.bf16.mxu1 %v3646_v55 }
 0x31d   :  { %3078 = vmatpush1.bf16.msra.mxu0 %v3664_v61 }
 0x31e   :  { %3110 = vmatpush1.bf16.msra.mxu1 %v3668_v62  ;;  %3080 = vmatprep.subr.bf16.mxu0 %v3670_v63 }
 0x31f   :  { %3112 = vmatprep.subr.bf16.mxu1 %v3682_v11 }
 0x321   :  { %3082 = vmatpush1.bf16.msra.mxu0 %v3700_v19 }
 0x322   :  { %3114 = vmatpush1.bf16.msra.mxu1 %v3704_v21  ;;  %3084 = vmatprep.subr.bf16.mxu0 %v3706_v22 }
 0x323   :  { %3116 = vmatprep.subr.bf16.mxu1 %v3718_v28 }
 0x325   :  { %3086 = vmatpush1.bf16.msra.mxu0 %v3736_v37 }
 0x326   :  { %3118 = vmatpush1.bf16.msra.mxu1 %v3740_v39  ;;  %3088 = vmatprep.subr.bf16.mxu0 %v3742_v40 }
 0x327   :  { %3120 = vmatprep.subr.bf16.mxu1 %v3754_v45 }
 0x329   :  { %3090 = vmatpush1.bf16.msra.mxu0 %v3772_v54 }
 0x32a   :  { %3122 = vmatpush1.bf16.msra.mxu1 %v3776_v56  ;;  %3092 = vmatprep.subr.bf16.mxu0 %v3778_v57 }
 0x32b   :  { %3124 = vmatprep.subr.bf16.mxu1 %v3787_v60 }
 0x32d   :  { %3094 = vmatpush1.bf16.msra.mxu0 %v3796_v7 }
 0x32e   :  { %3126 = vmatpush1.bf16.msra.mxu1 %v3800_v12  ;;  %1706 = vmatprep.subr.mxu0 %v3475_v1 }
 0x32f   :  { %1777 = vmatprep.subr.mxu1 %v3480_v2 }
 0x3df   :  { %v1286_v43 = vpop.f32.mrb[6].mxu0  ;;  %v1357_v44 = vpop.f32.mrb[6].mxu1 }
 0x3e0   :  { %v1362_v47 = vadd.f32 %v1286_v43, %v3862_v27  ;;  %v1288_v52 = vpop.f32.mrb[7].mxu0  ;;  %v1359_v53 = vpop.f32.mrb[7].mxu1  ;;  %v1364_v59 = vadd.f32 %v1357_v44, %v3866_v31 }
 0x3e1   :  { %v1363_v58 = vadd.f32 %v1288_v52, %v3864_v30  ;;  %v1365_v0 = vadd.f32 %v1359_v53, %v3872_v49 }
 0x3e2   :  { %3382 = vtanh.f32 %v1362_v47 }
 0x3e3   :  { %3384 = vtanh.f32 %v1363_v58 }
 0x3e4   :  { %3386 = vtanh.f32 %v1364_v59 }
 0x3e5   :  { %3388 = vtanh.f32 %v1365_v0 }
 0x3ec   :  { %v3383_v6 = vpop.eup %3382 }
 0x3ed   :  { %v1370_v26 = vmul.f32 0.5, %v3383_v6  ;;  %v3385_v16 = vpop.eup %3384 }
 0x3ee   :  { %v1372_v23 = vmul.f32 0.5, %v3385_v16  ;;  %v3387_v32 = vpop.eup %3386 }
 0x3ef   :  { %v1371_v17 = vadd.f32 0.5, %v1370_v26  ;;  %v3389_v43 = vpop.eup %3388 }
 0x3f0   :  { %v1373_v35 = vadd.f32 0.5, %v1372_v23  ;;  %v1374_v44 = vmul.f32 0.5, %v3389_v43 }
 0x3f1   :  { %v1377_v18 = vmul.f32 %v3387_v32, %v1371_v17 }
 0x3f2   :  { %v1376_v48 = vmul.f32 %v1373_v35, %v3992_v13  ;;  %v1375_v47 = vadd.f32 0.5, %v1374_v44  ;;  %v2797_v13 = vld [vmem:[%s4245_s0 + $0x5] ss:$0 sm:$0xff] }
 0x3f3   :  { %v1702_v59 = vsel %vm3523_vm1, %v2797_v13, 0.0 }
 0x3f4   :  { %v4048_v36 = vadd.f32 %v1377_v18, %v1376_v48 }
 0x3f6   :  { %3390 = vtanh.f32 %v4048_v36 }
 0x400   :  { %v3391_v52 = vpop.eup %3390 }
 0x401   :  { %v1380_v53 = vmul.f32 %v3391_v52, %v1375_v47 }
 0x403   :  { %1599 = vmatmul.mubr.f32.vlgmr.msra.gmra.mrb[8].mxu0 %v1380_v53  ;;  %1670 = vmatmul.mubr.f32.vlgmr.msra.gmra.mrb[8].mxu1 %v1380_v53  ;;  %v2659_v58 = vmul.f32 %v3881_v41, %v1380_v53 }
 0x404   :  { %1707 = vmatpush1.msra.mxu0 %v3485_v3  ;;  %1778 = vmatpush1.msra.mxu1 %v3494_v5 }
 0x405   :  { %2670 = vadd.xlane.f32.xlu1 %v2659_v58  ;;  %1770 = vmatprep.mubr.f32.mxu0 %v3436_v4 }
 0x406   :  { %1841 = vmatprep.mubr.f32.mxu1 %v3436_v4  ;;  %3128 = vmatprep.subr.bf16.mxu0 %v3508_v10 }
 0x407   :  { %3160 = vmatprep.subr.bf16.mxu1 %v3519_v14  ;;  %2798 = vmatmul.mubr.msk.f32.vlgmr.msra.gmra.mrb[10].mxu0 %vm112_vm0, %v1702_v59 }
 0x408   :  { %2799 = vmatmul.mubr.msk.f32.vlgmr.msra.gmra.mrb[10].mxu1 %vm112_vm0, %v1702_v59  ;;  %3130 = vmatpush1.bf16.msra.mxu0 %v3539_v20 }
 0x409   :  { %3162 = vmatpush1.bf16.msra.mxu1 %v3552_v24  ;;  %3132 = vmatprep.subr.bf16.mxu0 %v3554_v25 }
 0x40a   :  { %3164 = vmatprep.subr.bf16.mxu1 %v3567_v29  ;;  %1912 = vmatprep.mubr.f32.mxu0 %v3436_v4 }
 0x40b   :  { %1983 = vmatprep.mubr.f32.mxu1 %v3436_v4 }
 0x40c   :  { %3134 = vmatpush1.bf16.msra.mxu0 %v3580_v33 }
 0x40d   :  { %3166 = vmatpush1.bf16.msra.mxu1 %v3582_v34  ;;  %3136 = vmatprep.subr.bf16.mxu0 %v3594_v38 }
 0x40e   :  { %3168 = vmatprep.subr.bf16.mxu1 %v3606_v42 }
 0x410   :  { %3138 = vmatpush1.bf16.msra.mxu0 %v3619_v46 }
 0x411   :  { %3170 = vmatpush1.bf16.msra.mxu1 %v3632_v50  ;;  %3140 = vmatprep.subr.bf16.mxu0 %v3634_v51 }
 0x412   :  { %3172 = vmatprep.subr.bf16.mxu1 %v3646_v55 }
 0x414   :  { %3142 = vmatpush1.bf16.msra.mxu0 %v3664_v61 }
 0x415   :  { %3174 = vmatpush1.bf16.msra.mxu1 %v3668_v62  ;;  %3144 = vmatprep.subr.bf16.mxu0 %v3670_v63 }
 0x416   :  { %3176 = vmatprep.subr.bf16.mxu1 %v3682_v11 }
 0x418   :  { %3146 = vmatpush1.bf16.msra.mxu0 %v3700_v19 }
 0x419   :  { %3178 = vmatpush1.bf16.msra.mxu1 %v3704_v21  ;;  %3148 = vmatprep.subr.bf16.mxu0 %v3706_v22 }
 0x41a   :  { %3180 = vmatprep.subr.bf16.mxu1 %v3718_v28 }
 0x41c   :  { %3150 = vmatpush1.bf16.msra.mxu0 %v3736_v37 }
 0x41d   :  { %3182 = vmatpush1.bf16.msra.mxu1 %v3740_v39  ;;  %3152 = vmatprep.subr.bf16.mxu0 %v3742_v40 }
 0x41e   :  { %3184 = vmatprep.subr.bf16.mxu1 %v3754_v45 }
 0x420   :  { %3154 = vmatpush1.bf16.msra.mxu0 %v3772_v54 }
 0x421   :  { %3186 = vmatpush1.bf16.msra.mxu1 %v3776_v56  ;;  %3156 = vmatprep.subr.bf16.mxu0 %v3778_v57 }
 0x422   :  { %3188 = vmatprep.subr.bf16.mxu1 %v3787_v60 }
 0x424   :  { %3158 = vmatpush1.bf16.msra.mxu0 %v3796_v7 }
 0x425   :  { %3190 = vmatpush1.bf16.msra.mxu1 %v3800_v12  ;;  %2020 = vmatprep.subr.mxu0 %v3475_v1 }
 0x426   :  { %2091 = vmatprep.subr.mxu1 %v3480_v2 }
 0x4d6   :  { %v1600_v3 = vpop.f32.mrb[8].mxu0  ;;  %v1671_v5 = vpop.f32.mrb[8].mxu1 }
 0x4d7   :  { %v1676_v0 = vadd.f32 %v1600_v3, %v3862_v27  ;;  %v1602_v6 = vpop.f32.mrb[9].mxu0  ;;  %v1673_v26 = vpop.f32.mrb[9].mxu1  ;;  %v1678_v17 = vadd.f32 %v1671_v5, %v3866_v31 }
 0x4d8   :  { %v1677_v16 = vadd.f32 %v1602_v6, %v3864_v30  ;;  %v1679_v23 = vadd.f32 %v1673_v26, %v3872_v49  ;;  %v2800_v6 = vld [vmem:[%s4245_s0 + $0x6] ss:$0 sm:$0xff] }
 0x4d9   :  { %3392 = vtanh.f32 %v1676_v0  ;;  %v4111_v0 = vld [vmem:[%s4243_s2] sm:$0xff]  ;;  %v2016_v26 = vsel %vm3523_vm1, %v2800_v6, 0.0 }
 0x4da   :  { %3394 = vtanh.f32 %v1677_v16  ;;  %v3434_v16 = vld [vmem:[%s4243_s2 + $0x8] sm:$0xff] }
 0x4db   :  { %3396 = vtanh.f32 %v1678_v17  ;;  %v3435_v17 = vld [vmem:[%s4243_s2 + $0x18] sm:$0xff] }
 0x4dc   :  { %3398 = vtanh.f32 %v1679_v23 }
 0x4e3   :  { %v3393_v32 = vpop.eup %3392 }
 0x4e4   :  { %v1684_v35 = vmul.f32 0.5, %v3393_v32  ;;  %v3395_v1 = vpop.eup %3394 }
 0x4e5   :  { %v1686_v2 = vmul.f32 0.5, %v3395_v1  ;;  %v3397_v48 = vpop.eup %3396 }
 0x4e6   :  { %v1685_v18 = vadd.f32 0.5, %v1684_v35  ;;  %v3399_v53 = vpop.eup %3398 }
 0x4e7   :  { %v1687_v43 = vadd.f32 0.5, %v1686_v2  ;;  %v1688_v58 = vmul.f32 0.5, %v3399_v53 }
 0x4e8   :  { %v1691_v44 = vmul.f32 %v3397_v48, %v1685_v18 }
 0x4e9   :  { %v1690_v47 = vmul.f32 %v1687_v43, %v4048_v36  ;;  %v1689_v13 = vadd.f32 0.5, %v1688_v58  ;;  %v4117_v36 = vld [vmem:[%s4243_s2 + $0x10] sm:$0xff] }
 0x4eb   :  { %v4104_v52 = vadd.f32 %v1691_v44, %v1690_v47 }
 0x4ed   :  { %3400 = vtanh.f32 %v4104_v52 }
 0x4f7   :  { %v3401_v59 = vpop.eup %3400 }
 0x4f8   :  { %v1694_v3 = vmul.f32 %v3401_v59, %v1689_v13 }
 0x4fa   :  { %1913 = vmatmul.mubr.f32.vlgmr.msra.gmra.mrb[10].mxu0 %v1694_v3  ;;  %1984 = vmatmul.mubr.f32.vlgmr.msra.gmra.mrb[10].mxu1 %v1694_v3  ;;  %v2660_v5 = vmul.f32 %v3881_v41, %v1694_v3 }
 0x4fb   :  { %2021 = vmatpush1.msra.mxu0 %v4111_v0  ;;  %2092 = vmatpush1.msra.mxu1 %v4117_v36 }
 0x4fc   :  { %2672 = vadd.xlane.f32.xlu0 %v2660_v5  ;;  %2084 = vmatprep.mubr.f32.mxu0 %v3436_v4 }
 0x4fd   :  { %2155 = vmatprep.mubr.f32.mxu1 %v3436_v4  ;;  %3192 = vmatprep.subr.bf16.mxu0 %v3508_v10 }
 0x4fe   :  { %3224 = vmatprep.subr.bf16.mxu1 %v3519_v14  ;;  %2801 = vmatmul.mubr.msk.f32.vlgmr.msra.gmra.mrb[12].mxu0 %vm112_vm0, %v2016_v26 }
 0x4ff   :  { %2802 = vmatmul.mubr.msk.f32.vlgmr.msra.gmra.mrb[12].mxu1 %vm112_vm0, %v2016_v26  ;;  %3194 = vmatpush1.bf16.msra.mxu0 %v3539_v20 }
 0x500   :  { %3226 = vmatpush1.bf16.msra.mxu1 %v3552_v24  ;;  %3196 = vmatprep.subr.bf16.mxu0 %v3554_v25 }
 0x501   :  { %3228 = vmatprep.subr.bf16.mxu1 %v3567_v29  ;;  %2226 = vmatprep.mubr.f32.mxu0 %v3436_v4 }
 0x502   :  { %2297 = vmatprep.mubr.f32.mxu1 %v3436_v4 }
 0x503   :  { %3198 = vmatpush1.bf16.msra.mxu0 %v3580_v33 }
 0x504   :  { %3230 = vmatpush1.bf16.msra.mxu1 %v3582_v34  ;;  %3200 = vmatprep.subr.bf16.mxu0 %v3594_v38 }
 0x505   :  { %3232 = vmatprep.subr.bf16.mxu1 %v3606_v42 }
 0x507   :  { %3202 = vmatpush1.bf16.msra.mxu0 %v3619_v46 }
 0x508   :  { %3234 = vmatpush1.bf16.msra.mxu1 %v3632_v50  ;;  %3204 = vmatprep.subr.bf16.mxu0 %v3634_v51 }
 0x509   :  { %3236 = vmatprep.subr.bf16.mxu1 %v3646_v55 }
 0x50b   :  { %3206 = vmatpush1.bf16.msra.mxu0 %v3664_v61 }
 0x50c   :  { %3238 = vmatpush1.bf16.msra.mxu1 %v3668_v62  ;;  %3208 = vmatprep.subr.bf16.mxu0 %v3670_v63 }
 0x50d   :  { %3240 = vmatprep.subr.bf16.mxu1 %v3682_v11 }
 0x50f   :  { %3210 = vmatpush1.bf16.msra.mxu0 %v3700_v19 }
 0x510   :  { %3242 = vmatpush1.bf16.msra.mxu1 %v3704_v21  ;;  %3212 = vmatprep.subr.bf16.mxu0 %v3706_v22 }
 0x511   :  { %3244 = vmatprep.subr.bf16.mxu1 %v3718_v28 }
 0x513   :  { %3214 = vmatpush1.bf16.msra.mxu0 %v3736_v37 }
 0x514   :  { %3246 = vmatpush1.bf16.msra.mxu1 %v3740_v39  ;;  %3216 = vmatprep.subr.bf16.mxu0 %v3742_v40 }
 0x515   :  { %3248 = vmatprep.subr.bf16.mxu1 %v3754_v45 }
 0x517   :  { %3218 = vmatpush1.bf16.msra.mxu0 %v3772_v54 }
 0x518   :  { %3250 = vmatpush1.bf16.msra.mxu1 %v3776_v56  ;;  %3220 = vmatprep.subr.bf16.mxu0 %v3778_v57 }
 0x519   :  { %3252 = vmatprep.subr.bf16.mxu1 %v3787_v60 }
 0x51b   :  { %3222 = vmatpush1.bf16.msra.mxu0 %v3796_v7 }
 0x51c   :  { %3254 = vmatpush1.bf16.msra.mxu1 %v3800_v12  ;;  %2334 = vmatprep.subr.mxu0 %v3434_v16 }
 0x51d   :  { %2405 = vmatprep.subr.mxu1 %v3435_v17 }
 0x5cd   :  { %v1914_v23 = vpop.f32.mrb[10].mxu0  ;;  %v1985_v32 = vpop.f32.mrb[10].mxu1 }
 0x5ce   :  { %v1990_v35 = vadd.f32 %v1914_v23, %v3862_v27  ;;  %v1916_v1 = vpop.f32.mrb[11].mxu0  ;;  %v1987_v18 = vpop.f32.mrb[11].mxu1  ;;  %v1992_v48 = vadd.f32 %v1985_v32, %v3866_v31 }
 0x5cf   :  { %v1991_v2 = vadd.f32 %v1916_v1, %v3864_v30  ;;  %v1993_v43 = vadd.f32 %v1987_v18, %v3872_v49 }
 0x5d0   :  { %3402 = vtanh.f32 %v1990_v35 }
 0x5d1   :  { %3404 = vtanh.f32 %v1991_v2 }
 0x5d2   :  { %3406 = vtanh.f32 %v1992_v48 }
 0x5d3   :  { %3408 = vtanh.f32 %v1993_v43 }
 0x5da   :  { %v3403_v44 = vpop.eup %3402 }
 0x5db   :  { %v1998_v47 = vmul.f32 0.5, %v3403_v44  ;;  %v3405_v53 = vpop.eup %3404 }
 0x5dc   :  { %v2000_v13 = vmul.f32 0.5, %v3405_v53  ;;  %v3407_v59 = vpop.eup %3406 }
 0x5dd   :  { %v1999_v58 = vadd.f32 0.5, %v1998_v47  ;;  %v3409_v16 = vpop.eup %3408 }
 0x5de   :  { %v2001_v3 = vadd.f32 0.5, %v2000_v13  ;;  %v2002_v17 = vmul.f32 0.5, %v3409_v16  ;;  %v2681_v16 = vstv %s4248_s5 }
 0x5df   :  { %v2005_v5 = vmul.f32 %v3407_v59, %v1999_v58 }
 0x5e0   :  { %v2004_v6 = vmul.f32 %v2001_v3, %v4104_v52  ;;  %v2003_v23 = vadd.f32 0.5, %v2002_v17  ;;  %v2803_v52 = vld [vmem:[%s4245_s0 + $0x7] ss:$0 sm:$0xff]  ;;  %v2669_v3 = vpop.xlane.xlu1 %2668 }
 0x5e1   :  { %v2330_v18 = vsel %vm3523_vm1, %v2803_v52, 0.0 }
 0x5e2   :  { %v4174_v26 = vadd.f32 %v2005_v5, %v2004_v6 }
 0x5e4   :  { %3410 = vtanh.f32 %v4174_v26  ;;  %v2671_v6 = vpop.xlane.xlu1 %2670 }
 0x5e5   :  { %v2685_v52 = vadd.f32 %v2681_v16, %v2671_v6 }
 0x5ee   :  { %v3411_v32 = vpop.eup %3410 }
 0x5ef   :  { %v2008_v35 = vmul.f32 %v3411_v32, %v2003_v23  ;;  %v2684_v23 = vadd.f32 %v2681_v16, %v2669_v3 }
 0x5f1   :  { %2227 = vmatmul.mubr.f32.vlgmr.msra.gmra.mrb[12].mxu0 %v2008_v35  ;;  %2298 = vmatmul.mubr.f32.vlgmr.msra.gmra.mrb[12].mxu1 %v2008_v35  ;;  %v2661_v1 = vmul.f32 %v3881_v41, %v2008_v35  ;;  %v2700_v35 = vsub.s32 %v3504_v9, %v3502_v8 }
 0x5f2   :  { %2335 = vmatpush1.msra.mxu0 %v4111_v0  ;;  %2406 = vmatpush1.msra.mxu1 %v4117_v36 }
 0x5f3   :  { %2674 = vadd.xlane.f32.xlu1 %v2661_v1  ;;  %2398 = vmatprep.mubr.f32.mxu0 %v3436_v4 }
 0x5f4   :  { %2469 = vmatprep.mubr.f32.mxu1 %v3436_v4  ;;  %3256 = vmatprep.subr.bf16.mxu0 %v3508_v10 }
 0x5f5   :  { %3288 = vmatprep.subr.bf16.mxu1 %v3519_v14  ;;  %2804 = vmatmul.mubr.msk.f32.vlgmr.msra.gmra.mrb[14].mxu0 %vm112_vm0, %v2330_v18 }
 0x5f6   :  { %2805 = vmatmul.mubr.msk.f32.vlgmr.msra.gmra.mrb[14].mxu1 %vm112_vm0, %v2330_v18  ;;  %3258 = vmatpush1.bf16.msra.mxu0 %v3539_v20 }
 0x5f7   :  { %3290 = vmatpush1.bf16.msra.mxu1 %v3552_v24  ;;  %3260 = vmatprep.subr.bf16.mxu0 %v3554_v25 }
 0x5f8   :  { %3292 = vmatprep.subr.bf16.mxu1 %v3567_v29  ;;  %2540 = vmatprep.mubr.f32.mxu0 %v3436_v4 }
 0x5f9   :  { %2611 = vmatprep.mubr.f32.mxu1 %v3436_v4 }
 0x5fa   :  { %3262 = vmatpush1.bf16.msra.mxu0 %v3580_v33 }
 0x5fb   :  { %3294 = vmatpush1.bf16.msra.mxu1 %v3582_v34  ;;  %3264 = vmatprep.subr.bf16.mxu0 %v3594_v38 }
 0x5fc   :  { %3296 = vmatprep.subr.bf16.mxu1 %v3606_v42 }
 0x5fe   :  { %3266 = vmatpush1.bf16.msra.mxu0 %v3619_v46 }
 0x5ff   :  { %3298 = vmatpush1.bf16.msra.mxu1 %v3632_v50  ;;  %3268 = vmatprep.subr.bf16.mxu0 %v3634_v51 }
 0x600   :  { %3300 = vmatprep.subr.bf16.mxu1 %v3646_v55 }
 0x602   :  { %3270 = vmatpush1.bf16.msra.mxu0 %v3664_v61 }
 0x603   :  { %3302 = vmatpush1.bf16.msra.mxu1 %v3668_v62  ;;  %3272 = vmatprep.subr.bf16.mxu0 %v3670_v63 }
 0x604   :  { %3304 = vmatprep.subr.bf16.mxu1 %v3682_v11 }
 0x606   :  { %3274 = vmatpush1.bf16.msra.mxu0 %v3700_v19 }
 0x607   :  { %3306 = vmatpush1.bf16.msra.mxu1 %v3704_v21  ;;  %3276 = vmatprep.subr.bf16.mxu0 %v3706_v22 }
 0x608   :  { %3308 = vmatprep.subr.bf16.mxu1 %v3718_v28 }
 0x60a   :  { %3278 = vmatpush1.bf16.msra.mxu0 %v3736_v37 }
 0x60b   :  { %3310 = vmatpush1.bf16.msra.mxu1 %v3740_v39  ;;  %3280 = vmatprep.subr.bf16.mxu0 %v3742_v40 }
 0x60c   :  { %3312 = vmatprep.subr.bf16.mxu1 %v3754_v45 }
 0x60e   :  { %3282 = vmatpush1.bf16.msra.mxu0 %v3772_v54 }
 0x60f   :  { %3314 = vmatpush1.bf16.msra.mxu1 %v3776_v56  ;;  %3284 = vmatprep.subr.bf16.mxu0 %v3778_v57 }
 0x610   :  { %3316 = vmatprep.subr.bf16.mxu1 %v3787_v60 }
 0x612   :  { %3286 = vmatpush1.bf16.msra.mxu0 %v3796_v7 }
 0x613   :  { %3318 = vmatpush1.bf16.msra.mxu1 %v3800_v12 }
 0x680   :  { %v2675_v32 = vpop.xlane.xlu1 %2674 }
 0x6c4   :  { %v2228_v4 = vpop.f32.mrb[12].mxu0  ;;  %v2299_v10 = vpop.f32.mrb[12].mxu1 }
 0x6c5   :  { %v2304_v14 = vadd.f32 %v2228_v4, %v3862_v27  ;;  %v2230_v15 = vpop.f32.mrb[13].mxu0  ;;  %v2301_v20 = vpop.f32.mrb[13].mxu1  ;;  %v2306_v25 = vadd.f32 %v2299_v10, %v3866_v31  ;;  %v2687_v10 = vadd.f32 %v2681_v16, %v2675_v32 }
 0x6c6   :  { %v2305_v24 = vadd.f32 %v2230_v15, %v3864_v30  ;;  %v2307_v29 = vadd.f32 %v2301_v20, %v3872_v49 }
 0x6c7   :  { %3412 = vtanh.f32 %v2304_v14  ;;  %v2709_v14 = vrot.slane %v2684_v23, %v2700_v35 }
 0x6c8   :  { %3414 = vtanh.f32 %v2305_v24  ;;  %v2713_v24 = vrot.slane %v2685_v52, %v2700_v35 }
 0x6c9   :  { %3416 = vtanh.f32 %v2306_v25 }
 0x6ca   :  { %3418 = vtanh.f32 %v2307_v29 }
 0x6d1   :  { %v3413_v33 = vpop.eup %3412 }
 0x6d2   :  { %v2312_v34 = vmul.f32 0.5, %v3413_v33  ;;  %v3415_v38 = vpop.eup %3414  ;;  %v2721_v33 = vrot.slane %v2687_v10, %v2700_v35 }
 0x6d3   :  { %v2314_v46 = vmul.f32 0.5, %v3415_v38  ;;  %v3417_v50 = vpop.eup %3416 }
 0x6d4   :  { %v2313_v42 = vadd.f32 0.5, %v2312_v34  ;;  %v3419_v63 = vpop.eup %3418 }
 0x6d5   :  { %v2315_v51 = vadd.f32 0.5, %v2314_v46  ;;  %v2316_v11 = vmul.f32 0.5, %v3419_v63 }
 0x6d6   :  { %v2319_v55 = vmul.f32 %v3417_v50, %v2313_v42 }
 0x6d7   :  { %v2318_v61 = vmul.f32 %v2315_v51, %v4174_v26  ;;  %v2317_v19 = vadd.f32 0.5, %v2316_v11 }
 0x6d9   :  { %v2320_v62 = vadd.f32 %v2319_v55, %v2318_v61 }
 0x6db   :  { %3420 = vtanh.f32 %v2320_v62 }
 0x6e5   :  { %v3421_v21 = vpop.eup %3420 }
 0x6e6   :  { %v2322_v22 = vmul.f32 %v3421_v21, %v2317_v19 }
 0x6e8   :  { %2541 = vmatmul.mubr.f32.vlgmr.msra.gmra.mrb[14].mxu0 %v2322_v22  ;;  %2612 = vmatmul.mubr.f32.vlgmr.msra.gmra.mrb[14].mxu1 %v2322_v22  ;;  %v2662_v28 = vmul.f32 %v3881_v41, %v2322_v22 }
 0x6ea   :  { %2676 = vadd.xlane.f32.xlu0 %v2662_v28 }
 0x7bb   :  { %v2542_v37 = vpop.f32.mrb[14].mxu0  ;;  %v2613_v39 = vpop.f32.mrb[14].mxu1 }
 0x7bc   :  { %v2618_v40 = vadd.f32 %v2542_v37, %v3862_v27  ;;  %v2544_v45 = vpop.f32.mrb[15].mxu0  ;;  %v2615_v54 = vpop.f32.mrb[15].mxu1  ;;  %v2620_v57 = vadd.f32 %v2613_v39, %v3866_v31 }
 0x7bd   :  { %v2619_v56 = vadd.f32 %v2544_v45, %v3864_v30  ;;  %v2621_v60 = vadd.f32 %v2615_v54, %v3872_v49  ;;  %v2665_v49 = vpop.xlane.xlu0 %2664 }
 0x7be   :  { %3422 = vtanh.f32 %v2618_v40  ;;  %v2682_v1 = vadd.f32 %v2681_v16, %v2665_v49 }
 0x7bf   :  { %3424 = vtanh.f32 %v2619_v56 }
 0x7c0   :  { %3426 = vtanh.f32 %v2620_v57  ;;  %v2701_v20 = vrot.slane %v2682_v1, %v2700_v35 }
 0x7c1   :  { %3428 = vtanh.f32 %v2621_v60  ;;  %v2667_v5 = vpop.xlane.xlu0 %2666 }
 0x7c2   :  { %v2683_v17 = vadd.f32 %v2681_v16, %v2667_v5 }
 0x7c4   :  { %v2705_v4 = vrot.slane %v2683_v17, %v2700_v35 }
 0x7c5   :  { %v2673_v26 = vpop.xlane.xlu0 %2672 }
 0x7c6   :  { %v2731_v29 = vsel %vm2730_vm2, %v2705_v4, %v2701_v20 }
 0x7c7   :  { %v2733_v34 = vsel %vm2732_vm3, %v2709_v14, %v2731_v29 }
 0x7c8   :  { %v3423_v7 = vpop.eup %3422  ;;  %v2735_v9 = vsel %vm2734_vm4, %v2713_v24, %v2733_v34 }
 0x7c9   :  { %v2626_v12 = vmul.f32 0.5, %v3423_v7  ;;  %v3425_v0 = vpop.eup %3424  ;;  %v2677_v18 = vpop.xlane.xlu0 %2676 }
 0x7ca   :  { %v2628_v2 = vmul.f32 0.5, %v3425_v0  ;;  %v3427_v48 = vpop.eup %3426  ;;  %v2688_v15 = vadd.f32 %v2681_v16, %v2677_v18 }
 0x7cb   :  { %v2627_v36 = vadd.f32 0.5, %v2626_v12  ;;  %v3429_v30 = vpop.eup %3428 }
 0x7cc   :  { %v2629_v43 = vadd.f32 0.5, %v2628_v2  ;;  %v2630_v53 = vmul.f32 0.5, %v3429_v30  ;;  %v2725_v38 = vrot.slane %v2688_v15, %v2700_v35 }
 0x7cd   :  { %v2633_v27 = vmul.f32 %v3427_v48, %v2627_v36 }
 0x7ce   :  { %v2632_v44 = vmul.f32 %v2629_v43, %v2320_v62  ;;  %v2631_v58 = vadd.f32 0.5, %v2630_v53 }
 0x7d0   :  { %v2634_v47 = vadd.f32 %v2633_v27, %v2632_v44 }
 0x7d2   :  { %3430 = vtanh.f32 %v2634_v47 }
 0x7dc   :  { %v3431_v31 = vpop.eup %3430 }
 0x7dd   :  { %v2636_v13 = vmul.f32 %v3431_v31, %v2631_v58 }
 0x7df   :  { %v2663_v59 = vmul.f32 %v3881_v41, %v2636_v13  ;;  %v2686_v41 = vadd.f32 %v2681_v16, %v2673_v26 }
 0x7e1   :  { %2678 = vadd.xlane.f32.xlu1 %v2663_v59  ;;  %v2717_v25 = vrot.slane %v2686_v41, %v2700_v35 }
 0x7e3   :  { %v2737_v46 = vsel %vm2736_vm5, %v2717_v25, %v2735_v9 }
 0x7e4   :  { %v2739_v51 = vsel %vm2738_vm6, %v2721_v33, %v2737_v46 }
 0x7e5   :  { %v2741_v55 = vsel %vm2740_vm7, %v2725_v38, %v2739_v51 }
 0x86e   :  { %v2679_v8 = vpop.xlane.xlu1 %2678 }
 0x86f   :  { %v2689_v42 = vadd.f32 %v2681_v16, %v2679_v8 }
 0x871   :  { %v2729_v50 = vrot.slane %v2689_v42, %v2700_v35 }
 0x873   :  { %v2743_v61 = vsel %vm2742_vm8, %v2729_v50, %v2741_v55 }
 0x874   :  { %2745 = vxpose.xlu0.b32.start.end [1/1] (short) (narrow) %v2743_v61, 8 }
 0x8f4   :  { %v2761_v62 = vpop.trf.xlu0 }
 0x8f5   :  { %2777 = vst.msk [vmem:[%s4249_s6] sm:$0xff] %vm112_vm0, %v2761_v62 }

</bundles_post_ra>
